<compile_context>
chip_gen: v6e
topology: v6e:2x2x1
jax: 0.10.0
libtpu: 0.0.40
codegen_flags: <defaults>
</compile_context>

<pallas_src>
import functools

import jax
import jax.numpy as jnp
from jax import lax
from jax.experimental import pallas as pl
from jax.experimental.pallas import tpu as pltpu

# Set to jnp.bfloat16 on v6e/v7x for ~2x MXU throughput; kept f32 here so the
# numerical check against the f32 reference stays tight (v5e has no bf16 VPU).
MATMUL_DTYPE = jnp.float32


def _round_up(v, m):
    return (v + m - 1) // m * m


def _pad_rows(a, rows):
    r = a.shape[0]
    if rows == r:
        return a
    pad = [(0, rows - r)] + [(0, 0)] * (a.ndim - 1)
    return jnp.pad(a, pad)


# ---------------- Kernel 1: row-blocked linear  y = [relu](x @ W^T + b) ----------------
def _linear_kernel(x_ref, w_ref, b_ref, o_ref, *, relu):
    y = jnp.dot(x_ref[...].astype(MATMUL_DTYPE), w_ref[...].astype(MATMUL_DTYPE),
                preferred_element_type=jnp.float32) + b_ref[...]
    if relu:
        y = jnp.maximum(y, 0.0)
    o_ref[...] = y


def pallas_linear(x, w_t, b, *, relu=False, block_rows=256):
    # x: [M, in], w_t: [in, out] (already transposed), b: [1, out]
    M, K = x.shape
    out = w_t.shape[1]
    tm = min(block_rows, _round_up(M, 8))
    Mp = _round_up(M, tm)
    xp = _pad_rows(x, Mp)
    y = pl.pallas_call(
        functools.partial(_linear_kernel, relu=relu),
        grid=(Mp // tm,),
        in_specs=[
            pl.BlockSpec((tm, K), lambda i: (i, 0)),
            pl.BlockSpec((K, out), lambda i: (0, 0)),
            pl.BlockSpec((1, out), lambda i: (0, 0)),
        ],
        out_specs=pl.BlockSpec((tm, out), lambda i: (i, 0)),
        out_shape=jax.ShapeDtypeStruct((Mp, out), jnp.float32),
        compiler_params=pltpu.CompilerParams(dimension_semantics=("parallel",)),
    )(xp, w_t, b)
    return y[:M]


# ---------------- Kernel 2: visit attention for ALL layers, grid over graphs ----------------
# For every layer l and graph b:
#   alpha = softmax(visit_node @ Wa_l^T + ba_l, axis=visit)
#   beta  = tanh(visit_node @ Wb_l^T + bb_l) * lambda_j
#   attn[b, l] = sum_visit(alpha * beta)                       -> [B, L, C]
# All L alpha + beta projections fused into one [V, C] @ [C, L*C + L] matmul per graph.
def _attn_kernel(vn_ref, w_ref, b_ref, lam_ref, o_ref, *, C, L):
    vn = vn_ref[0]                                                # [V, C]
    h = jnp.dot(vn.astype(MATMUL_DTYPE), w_ref[...].astype(MATMUL_DTYPE),
                preferred_element_type=jnp.float32) + b_ref[...]  # [V, L*C + L]
    ha = h[:, :L * C]                                             # alpha logits, all layers
    hb = h[:, L * C:]                                             # beta logits,  all layers
    # one EUP pass over the whole slab; softmax over the visit (sublane) axis
    m = jnp.max(ha, axis=0, keepdims=True)
    e = jnp.exp(ha - m)
    alpha = e / jnp.sum(e, axis=0, keepdims=True)                 # [V, L*C]
    beta = jnp.tanh(hb) * lam_ref[...]                            # [V, L]
    # NOTE: per-layer column slabs are C-wide (pad C to 128 at real vocab sizes).
    parts = [jnp.sum(alpha[:, l * C:(l + 1) * C] * beta[:, l:l + 1],
                     axis=0, keepdims=True) for l in range(L)]    # L x [1, C]
    o_ref[0] = jnp.concatenate(parts, axis=1)                     # one lane-dense store


def pallas_visit_attention(visit_node, w_f, b_f, lam, L):
    B, V, C = visit_node.shape
    W = w_f.shape[1]
    out = pl.pallas_call(
        functools.partial(_attn_kernel, C=C, L=L),
        grid=(B,),
        in_specs=[
            pl.BlockSpec((1, V, C), lambda b: (b, 0, 0)),
            pl.BlockSpec((C, W), lambda b: (0, 0)),
            pl.BlockSpec((1, W), lambda b: (0, 0)),
            pl.BlockSpec((V, 1), lambda b: (0, 0)),
        ],
        out_specs=pl.BlockSpec((1, 1, L * C), lambda b: (b, 0, 0)),
        out_shape=jax.ShapeDtypeStruct((B, 1, L * C), jnp.float32),
        compiler_params=pltpu.CompilerParams(dimension_semantics=("parallel",)),
    )(visit_node, w_f, b_f, lam)
    return out.reshape(B, L, C)


# ---------------- Kernel 3: BAT (BiAttentionGNNConv) aggregation ----------------
# msg_e = relu(x[src_e]*attn_{src_e} + (ea_e . wr + wrb)*ea_e)
# agg   = scatter_add(msg, dst) + (1+eps)*x           (nn projection done outside)
# Edge blocks stream through an "arbitrary" grid; the [N,H] output block (constant
# index map) is the resident accumulator; gather AND scatter are one-hot MXU matmuls.
def _bat_kernel(x_ref, attn_ref, ea_ref, src_ref, dst_ref, wr_ref, wrb_ref,
                o_ref, xs_ref, *, eps, n_nodes):
    eb = pl.program_id(0)
    te = ea_ref.shape[0]

    @pl.when(eb == 0)
    def _init():
        xv = x_ref[...]
        o_ref[...] = (1.0 + eps) * xv                 # self term
        xs_ref[...] = xv * attn_ref[...]              # attention-scaled node features

    ea = ea_ref[...]                                  # [te, H]
    # width-1 W_R projection: VPU multiply + lane reduce (not an MXU pass)
    w_rel = jnp.sum(ea * wr_ref[...], axis=-1, keepdims=True) + wrb_ref[...]   # [te, 1]

    # gather x[src]*attn on the MXU (padded edges use src == n_nodes -> all-zero row)
    src = src_ref[...]                                                          # [te, 1]
    oh_src = (lax.broadcasted_iota(jnp.int32, (te, n_nodes), 1) == src
              ).astype(jnp.float32)                                             # [te, N]
    x_att = jnp.dot(oh_src, xs_ref[...], preferred_element_type=jnp.float32)    # [te, H]

    msg = jnp.maximum(x_att + w_rel * ea, 0.0)                                  # [te, H]

    # scatter-add on the MXU (padded edges use dst == n_nodes -> all-zero column)
    dst = dst_ref[0]                                                            # [1, te]
    oh_dst = (lax.broadcasted_iota(jnp.int32, (n_nodes, te), 0) == dst
              ).astype(jnp.float32)                                             # [N, te]
    o_ref[...] += jnp.dot(oh_dst, msg, preferred_element_type=jnp.float32)


def pallas_bat_aggregate(x, attn_col, edge_attr_p, src_p, dst_p, wr_row, wr_b,
                         *, eps, te):
    # x: [Np, H], attn_col: [Np, 1], edge_attr_p: [Ep, H],
    # src_p: [Ep, 1] int32, dst_p: [Ep//te, 1, te] int32 (padded entries == Np)
    Np, H = x.shape
    Ep = edge_attr_p.shape[0]
    nb = Ep // te
    return pl.pallas_call(
        functools.partial(_bat_kernel, eps=eps, n_nodes=Np),
        grid=(nb,),
        in_specs=[
            pl.BlockSpec((Np, H), lambda e: (0, 0)),         # x (resident)
            pl.BlockSpec((Np, 1), lambda e: (0, 0)),         # per-node attention
            pl.BlockSpec((te, H), lambda e: (e, 0)),         # edge_attr block
            pl.BlockSpec((te, 1), lambda e: (e, 0)),         # src indices block
            pl.BlockSpec((1, 1, te), lambda e: (e, 0, 0)),   # dst indices block
            pl.BlockSpec((1, H), lambda e: (0, 0)),          # W_R row
            pl.BlockSpec((1, 1), lambda e: (0, 0)),          # W_R bias
        ],
        out_specs=pl.BlockSpec((Np, H), lambda e: (0, 0)),   # resident accumulator
        out_shape=jax.ShapeDtypeStruct((Np, H), jnp.float32),
        scratch_shapes=[pltpu.VMEM((Np, H), jnp.float32)],   # x * attn (filled at eb==0)
        input_output_aliases={0: 0},                         # reuse x's HBM buffer
        compiler_params=pltpu.CompilerParams(dimension_semantics=("arbitrary",)),
    )(x, attn_col, edge_attr_p, src_p, dst_p, wr_row, wr_b)


# ---------------- Kernel 4: readout (mean-pool + ehr-node branch + joint MLP) ----------------
# Grid runs a K-reduction over vocabulary chunks for ehr @ node_emb so the full
# embedding table never has to be resident in VMEM.
def _readout_kernel(x_ref, boh_ref, ehr_ref, nemb_ref, lin_w_ref, lin_b_ref,
                    w1_ref, w2_ref, bout_ref, o_ref, xn_acc, es_acc):
    k = pl.program_id(0)

    @pl.when(k == 0)
    def _init():
        xn_acc[...] = jnp.zeros_like(xn_acc)
        es_acc[...] = jnp.zeros_like(es_acc)

    ehr = ehr_ref[...]                                                 # [B, kc]
    xn_acc[...] += jnp.dot(ehr, nemb_ref[...], preferred_element_type=jnp.float32)
    es_acc[...] += jnp.sum(ehr, axis=1, keepdims=True)

    @pl.when(k == pl.num_programs(0) - 1)
    def _fin():
        boh = boh_ref[...]                                             # [B, N]
        cnt = jnp.sum(boh, axis=1, keepdims=True)
        x_graph = jnp.dot(boh, x_ref[...], preferred_element_type=jnp.float32) / cnt
        xn = xn_acc[...] / es_acc[...]
        xn = jnp.dot(xn, lin_w_ref[...], preferred_element_type=jnp.float32) + lin_b_ref[...]
        o_ref[...] = (jnp.dot(x_graph, w1_ref[...], preferred_element_type=jnp.float32)
                      + jnp.dot(xn, w2_ref[...], preferred_element_type=jnp.float32)
                      + bout_ref[...])


def pallas_readout(x, batch_oh, ehr, node_emb, lin_w_t, lin_b, w1_t, w2_t, b_out,
                   *, vocab_block=512):
    B, N = batch_oh.shape
    K, emb = node_emb.shape
    out_ch = w1_t.shape[1]
    kc = K if K <= vocab_block else vocab_block
    Kp = _round_up(K, kc)
    ehr_p = jnp.pad(ehr, ((0, 0), (0, Kp - K))) if Kp != K else ehr
    nemb_p = _pad_rows(node_emb, Kp)
    nb = Kp // kc
    return pl.pallas_call(
        _readout_kernel,
        grid=(nb,),
        in_specs=[
            pl.BlockSpec((N, x.shape[1]), lambda k: (0, 0)),
            pl.BlockSpec((B, N), lambda k: (0, 0)),
            pl.BlockSpec((B, kc), lambda k: (0, k)),
            pl.BlockSpec((kc, emb), lambda k: (k, 0)),
            pl.BlockSpec(lin_w_t.shape, lambda k: (0, 0)),
            pl.BlockSpec(lin_b.shape, lambda k: (0, 0)),
            pl.BlockSpec(w1_t.shape, lambda k: (0, 0)),
            pl.BlockSpec(w2_t.shape, lambda k: (0, 0)),
            pl.BlockSpec(b_out.shape, lambda k: (0, 0)),
        ],
        out_specs=pl.BlockSpec((B, out_ch), lambda k: (0, 0)),
        out_shape=jax.ShapeDtypeStruct((B, out_ch), jnp.float32),
        scratch_shapes=[pltpu.VMEM((B, emb), jnp.float32),
                        pltpu.VMEM((B, 1), jnp.float32)],
        compiler_params=pltpu.CompilerParams(dimension_semantics=("arbitrary",)),
    )(x, batch_oh, ehr_p, nemb_p, lin_w_t, lin_b, w1_t, w2_t, b_out)


# ---------------- Full forward (Pallas kernels + thin glue) ----------------
def graphcare_forward(params, node_ids, rel_ids, edge_index, batch, visit_node,
                      ehr_nodes, *, max_visit, decay_rate, layers, hidden_dim,
                      eps=0.0, edge_block=256):
    lin_w_t = params['lin_w'].T
    lin_b = params['lin_b'][None, :]
    N = node_ids.shape[0]
    E = rel_ids.shape[0]
    H = hidden_dim
    L = layers
    B, V, C = visit_node.shape

    # --- one fused row-blocked linear projection for node + relation embeddings ---
    feats = jnp.concatenate([params['node_emb'][node_ids],
                             params['rel_emb'][rel_ids]], axis=0)   # glue: emb gathers
    proj = pallas_linear(feats, lin_w_t, lin_b)
    x, edge_attr = proj[:N], proj[N:]

    # --- visit attention for ALL layers (depends only on visit_node; hoisted) ---
    w_f = jnp.concatenate(
        [params['layer'][l]['alpha_w'].T for l in range(L)]
        + [params['layer'][l]['beta_w'].T for l in range(L)], axis=1)   # [C, L*C+L]
    b_f = jnp.concatenate(
        [params['layer'][l]['alpha_b'] for l in range(L)]
        + [params['layer'][l]['beta_b'] for l in range(L)])[None, :]    # [1, L*C+L]
    j = jnp.arange(max_visit, dtype=jnp.float32)
    lam = jnp.exp(decay_rate * (max_visit - j))[:, None]                # [V, 1]
    attn_all = pallas_visit_attention(visit_node, w_f, b_f, lam, L)     # [B, L, C]

    # --- pad node/edge arrays once; padded edges use an out-of-range sentinel ---
    Np = _round_up(N, 8)
    te = max(8, _round_up(min(edge_block, E), 8))
    Ep = _round_up(E, te)
    src = edge_index[0].astype(jnp.int32)
    dst = edge_index[1].astype(jnp.int32)
    src_p = jnp.full((Ep, 1), Np, dtype=jnp.int32).at[:E, 0].set(src)
    dst_p = jnp.full((Ep,), Np, dtype=jnp.int32).at[:E].set(dst).reshape(Ep // te, 1, te)
    ea_p = _pad_rows(edge_attr, Ep)
    x = _pad_rows(x, Np)

    # TODO(synk): in_drop random edge dropping uses host-side python `random`; not modeled.
    for l in range(L):
        p = params['layer'][l]
        attn_node = attn_all[batch, l, node_ids]                        # [N] glue gather
        attn_col = _pad_rows(attn_node[:, None], Np)                    # [Np, 1]
        agg = pallas_bat_aggregate(x, attn_col, ea_p, src_p, dst_p,
                                   p['wr_w'], p['wr_b'].reshape(1, 1),
                                   eps=eps, te=te)
        # GIN-style nn projection + F.relu as a row-blocked parallel linear
        x = pallas_linear(agg, p['nn_w'].T, p['nn_b'][None, :], relu=True)
        # TODO(synk): F.dropout(p=0.5) is training-only; identity at inference.

    x = x[:N]
    batch_oh = jax.nn.one_hot(batch, B, dtype=jnp.float32).T            # [B, N] (B small)
    w1_t = params['mlp_w'][:, :H].T
    w2_t = params['mlp_w'][:, H:].T
    return pallas_readout(x, batch_oh, ehr_nodes, params['node_emb'],
                          lin_w_t, lin_b, w1_t, w2_t, params['mlp_b'][None, :])


# ---------------- Pure-JAX reference (for numerical check) ----------------
def reference_forward(params, node_ids, rel_ids, edge_index, batch, visit_node, ehr_nodes,
                      *, max_visit, decay_rate, layers, eps=0.0):
    x = params['node_emb'][node_ids]
    ea = params['rel_emb'][rel_ids]
    x = x @ params['lin_w'].T + params['lin_b']
    ea = ea @ params['lin_w'].T + params['lin_b']
    src, dst = edge_index[0], edge_index[1]
    N = node_ids.shape[0]
    B = visit_node.shape[0]
    j = jnp.arange(max_visit, dtype=jnp.float32)
    lam = jnp.exp(decay_rate * (max_visit - j)).reshape(1, max_visit, 1)
    for l in range(layers):
        p = params['layer'][l]
        alpha = jax.nn.softmax(visit_node @ p['alpha_w'].T + p['alpha_b'], axis=1)
        beta = jnp.tanh(visit_node @ p['beta_w'].T + p['beta_b']) * lam
        attn = jnp.sum(alpha * beta, axis=1)
        attn_e = attn[batch[src], node_ids[src]][:, None]
        w_rel = ea @ p['wr_w'].T + p['wr_b']
        msg = jax.nn.relu(x[src] * attn_e + w_rel * ea)
        agg = jnp.zeros((N, x.shape[1]), jnp.float32).at[dst].add(msg)
        out = agg + (1.0 + eps) * x
        x = jax.nn.relu(out @ p['nn_w'].T + p['nn_b'])
    counts = jnp.zeros((B,), jnp.float32).at[batch].add(1.0)[:, None]
    x_graph = jnp.zeros((B, x.shape[1]), jnp.float32).at[batch].add(x) / counts
    xn = (ehr_nodes @ params['node_emb']) / jnp.sum(ehr_nodes, axis=1, keepdims=True)
    xn = xn @ params['lin_w'].T + params['lin_b']
    xc = jnp.concatenate([x_graph, xn], axis=1)
    return xc @ params['mlp_w'].T + params['mlp_b']


# ---------------- Deterministic parameter init ----------------
def init_params(key, num_nodes, num_rels, emb, hidden, out_ch, layers):
    ks = jax.random.split(key, 6 + 8 * layers)

    def w(k, shape, scale=0.1):
        return (scale * jax.random.normal(k, shape)).astype(jnp.float32)

    params = {
        'node_emb': w(ks[0], (num_nodes, emb)),
        'rel_emb': w(ks[1], (num_rels, emb)),
        'lin_w': w(ks[2], (hidden, emb)),
        'lin_b': w(ks[3], (hidden,)),
        'mlp_w': w(ks[4], (out_ch, 2 * hidden)),
        'mlp_b': w(ks[5], (out_ch,)),
        'layer': [],
    }
    idx = 6
    for _ in range(layers):
        params['layer'].append({
            'alpha_w': w(ks[idx + 0], (num_nodes, num_nodes)),
            'alpha_b': w(ks[idx + 1], (num_nodes,)),
            'beta_w': w(ks[idx + 2], (1, num_nodes)),
            'beta_b': w(ks[idx + 3], (1,)),
            'wr_w': w(ks[idx + 4], (1, hidden)),
            'wr_b': w(ks[idx + 5], (1,)),
            'nn_w': w(ks[idx + 6], (hidden, hidden)),
            'nn_b': w(ks[idx + 7], (hidden,)),
        })
        idx += 8
    return params


if __name__ == "__main__":
    # Small shapes consistent with the module
    num_nodes, num_rels = 16, 8        # vocab sizes for node / relation embeddings
    max_visit = 4
    embedding_dim, hidden_dim, out_channels = 32, 32, 5
    layers = 3
    decay_rate = 0.03
    B, N, E = 2, 12, 24                # graphs in batch, total graph nodes, edges

    key = jax.random.PRNGKey(0)
    pkey, k1, k2, k3, k4, k5, k6 = jax.random.split(key, 7)

    params = init_params(pkey, num_nodes, num_rels, embedding_dim, hidden_dim,
                         out_channels, layers)

    node_ids = jax.random.randint(k1, (N,), 0, num_nodes, dtype=jnp.int32)
    rel_ids = jax.random.randint(k2, (E,), 0, num_rels, dtype=jnp.int32)
    batch = jnp.array([0] * (N // 2) + [1] * (N // 2), dtype=jnp.int32)
    src = jnp.concatenate([
        jax.random.randint(k3, (E // 2,), 0, N // 2, dtype=jnp.int32),
        jax.random.randint(k4, (E // 2,), N // 2, N, dtype=jnp.int32)])
    dst = jnp.concatenate([
        jax.random.randint(k5, (E // 2,), 0, N // 2, dtype=jnp.int32),
        jax.random.randint(k6, (E // 2,), N // 2, N, dtype=jnp.int32)])
    edge_index = jnp.stack([src, dst], axis=0)
    visit_node = jax.random.bernoulli(
        jax.random.PRNGKey(7), 0.3, (B, max_visit, num_nodes)).astype(jnp.float32)
    ehr_nodes = jax.random.bernoulli(
        jax.random.PRNGKey(8), 0.4, (B, num_nodes)).astype(jnp.float32)
    ehr_nodes = ehr_nodes.at[:, 0].set(1.0)   # guarantee nonzero row sums

    forward = jax.jit(functools.partial(
        graphcare_forward, max_visit=max_visit, decay_rate=decay_rate,
        layers=layers, hidden_dim=hidden_dim, eps=0.0, edge_block=256))

    logits = forward(params, node_ids, rel_ids, edge_index, batch, visit_node, ehr_nodes)
    logits = jax.block_until_ready(logits)

    ref = reference_forward(
        params, node_ids, rel_ids, edge_index, batch, visit_node, ehr_nodes,
        max_visit=max_visit, decay_rate=decay_rate, layers=layers, eps=0.0)
    ref = jax.block_until_ready(ref)

    assert logits.shape == (B, out_channels)
    assert jnp.allclose(logits, ref, rtol=2e-2, atol=2e-2), (logits, ref)
    print("KERNEL_OK")
</pallas_src>

<mosaic_0001>
module attributes {stable_mosaic.version = 11 : i64} {
  func.func @_linear_kernel(%arg0: i32, %arg1: memref<40x32xf32, #tpu.memory_space<vmem>>, %arg2: memref<32x32xf32, #tpu.memory_space<vmem>>, %arg3: memref<1x32xf32, #tpu.memory_space<vmem>>, %arg4: memref<40x32xf32, #tpu.memory_space<vmem>>) attributes {dimension_semantics = [#tpu.dimension_semantics<parallel>], iteration_bounds = array<i64: 1>, scalar_prefetch = 0 : i64, scratch_operands = 0 : i64, tpu.core_type = #tpu.core_type<tc>, window_params = [{transform_indices = @transform_0, window_bounds = array<i64: 40, 32>}, {pipeline_mode = #tpu.pipeline_mode<synchronous>, transform_indices = @transform_1, window_bounds = array<i64: 32, 32>}, {pipeline_mode = #tpu.pipeline_mode<synchronous>, transform_indices = @transform_2, window_bounds = array<i64: 1, 32>}, {transform_indices = @transform_3, window_bounds = array<i64: 40, 32>}]} {
    %c0 = arith.constant 0 : index
    %c0_0 = arith.constant 0 : index
    %0 = vector.load %arg1[%c0, %c0_0] : memref<40x32xf32, #tpu.memory_space<vmem>>, vector<40x32xf32>
    %c0_1 = arith.constant 0 : index
    %c0_2 = arith.constant 0 : index
    %1 = vector.load %arg2[%c0_1, %c0_2] : memref<32x32xf32, #tpu.memory_space<vmem>>, vector<32x32xf32>
    %cst = arith.constant dense<0.000000e+00> : vector<40x32xf32>
    %2 = tpu.matmul %0, %1, %cst {dimension_numbers = #tpu.dot_dimension_numbers<[1], [0], [0], [1], [0, 0, 1, 1], [], []>} : vector<40x32xf32>, vector<32x32xf32>, vector<40x32xf32> -> vector<40x32xf32>
    %c0_3 = arith.constant 0 : index
    %c0_4 = arith.constant 0 : index
    %3 = vector.load %arg3[%c0_3, %c0_4] : memref<1x32xf32, #tpu.memory_space<vmem>>, vector<1x32xf32>
    %4 = vector.broadcast %3 : vector<1x32xf32> to vector<40x32xf32>
    %5 = arith.addf %2, %4 : vector<40x32xf32>
    %c0_5 = arith.constant 0 : index
    %c0_6 = arith.constant 0 : index
    %6 = vector.load %arg4[%c0_5, %c0_6] : memref<40x32xf32, #tpu.memory_space<vmem>>, vector<40x32xf32>
    tpu.vector_store %arg4[%c0_5, %c0_6], %5 {strides = array<i32>} : memref<40x32xf32, #tpu.memory_space<vmem>>, vector<40x32xf32>,
    return
  }
  func.func @transform_0(%arg0: i32) -> (i32, i32) {
    %c0_i32 = arith.constant 0 : i32
    %c0_i32_0 = arith.constant 0 : i32
    return %arg0, %c0_i32 : i32, i32
  }
  func.func @transform_1(%arg0: i32) -> (i32, i32) {
    %c0_i32 = arith.constant 0 : i32
    %c0_i32_0 = arith.constant 0 : i32
    %c0_i32_1 = arith.constant 0 : i32
    return %c0_i32, %c0_i32_0 : i32, i32
  }
  func.func @transform_2(%arg0: i32) -> (i32, i32) {
    %c0_i32 = arith.constant 0 : i32
    %c0_i32_0 = arith.constant 0 : i32
    %c0_i32_1 = arith.constant 0 : i32
    return %c0_i32, %c0_i32_0 : i32, i32
  }
  func.func @transform_3(%arg0: i32) -> (i32, i32) {
    %c0_i32 = arith.constant 0 : i32
    %c0_i32_0 = arith.constant 0 : i32
    return %arg0, %c0_i32 : i32, i32
  }
}

module attributes {stable_mosaic.version = 11 : i64} {
  func.func @_attn_kernel(%arg0: i32, %arg1: memref<1x4x16xf32, #tpu.memory_space<vmem>>, %arg2: memref<16x51xf32, #tpu.memory_space<vmem>>, %arg3: memref<1x51xf32, #tpu.memory_space<vmem>>, %arg4: memref<4x1xf32, #tpu.memory_space<vmem>>, %arg5: memref<1x1x48xf32, #tpu.memory_space<vmem>>) attributes {dimension_semantics = [#tpu.dimension_semantics<parallel>], iteration_bounds = array<i64: 2>, scalar_prefetch = 0 : i64, scratch_operands = 0 : i64, tpu.core_type = #tpu.core_type<tc>, window_params = [{transform_indices = @transform_0, window_bounds = array<i64: 1, 4, 16>}, {pipeline_mode = #tpu.pipeline_mode<synchronous>, transform_indices = @transform_1, window_bounds = array<i64: 16, 51>}, {pipeline_mode = #tpu.pipeline_mode<synchronous>, transform_indices = @transform_2, window_bounds = array<i64: 1, 51>}, {pipeline_mode = #tpu.pipeline_mode<synchronous>, transform_indices = @transform_3, window_bounds = array<i64: 4, 1>}, {transform_indices = @transform_4, window_bounds = array<i64: 1, 1, 48>}]} {
    %c0 = arith.constant 0 : index
    %c0_0 = arith.constant 0 : index
    %c0_1 = arith.constant 0 : index
    %0 = vector.load %arg1[%c0, %c0_0, %c0_1] : memref<1x4x16xf32, #tpu.memory_space<vmem>>, vector<1x4x16xf32>
    %1 = vector.shape_cast %0 : vector<1x4x16xf32> to vector<4x16xf32>
    %c0_2 = arith.constant 0 : index
    %c0_3 = arith.constant 0 : index
    %2 = vector.load %arg2[%c0_2, %c0_3] : memref<16x51xf32, #tpu.memory_space<vmem>>, vector<16x51xf32>
    %cst = arith.constant dense<0.000000e+00> : vector<4x51xf32>
    %3 = tpu.matmul %1, %2, %cst {dimension_numbers = #tpu.dot_dimension_numbers<[1], [0], [0], [1], [0, 0, 1, 1], [], []>} : vector<4x16xf32>, vector<16x51xf32>, vector<4x51xf32> -> vector<4x51xf32>
    %c0_4 = arith.constant 0 : index
    %c0_5 = arith.constant 0 : index
    %4 = vector.load %arg3[%c0_4, %c0_5] : memref<1x51xf32, #tpu.memory_space<vmem>>, vector<1x51xf32>
    %5 = vector.broadcast %4 : vector<1x51xf32> to vector<4x51xf32>
    %6 = arith.addf %3, %5 : vector<4x51xf32>
    %7 = vector.extract_strided_slice %6 {offsets = [0, 0], sizes = [4, 48], strides = [1, 1]} : vector<4x51xf32> to vector<4x48xf32>
    %8 = vector.extract_strided_slice %6 {offsets = [0, 48], sizes = [4, 3], strides = [1, 1]} : vector<4x51xf32> to vector<4x3xf32>
    %cst_6 = arith.constant dense<0xFF800000> : vector<48xf32>
    %9 = vector.multi_reduction <maximumf>, %7, %cst_6 [0] : vector<4x48xf32> to vector<48xf32>
    %10 = vector.shape_cast %9 : vector<48xf32> to vector<1x48xf32>
    %11 = vector.broadcast %10 : vector<1x48xf32> to vector<4x48xf32>
    %12 = arith.subf %7, %11 : vector<4x48xf32>
    %13 = math.exp %12 : vector<4x48xf32>
    %cst_7 = arith.constant dense<0.000000e+00> : vector<48xf32>
    %14 = vector.multi_reduction <add>, %13, %cst_7 [0] : vector<4x48xf32> to vector<48xf32>
    %15 = vector.shape_cast %14 : vector<48xf32> to vector<1x48xf32>
    %16 = vector.broadcast %15 : vector<1x48xf32> to vector<4x48xf32>
    %17 = arith.divf %13, %16 : vector<4x48xf32>
    %18 = math.tanh %8 : vector<4x3xf32>
    %c0_8 = arith.constant 0 : index
    %c0_9 = arith.constant 0 : index
    %19 = vector.load %arg4[%c0_8, %c0_9] : memref<4x1xf32, #tpu.memory_space<vmem>>, vector<4x1xf32>
    %20 = vector.broadcast %19 : vector<4x1xf32> to vector<4x3xf32>
    %21 = arith.mulf %18, %20 : vector<4x3xf32>
    %22 = vector.extract_strided_slice %17 {offsets = [0, 0], sizes = [4, 16], strides = [1, 1]} : vector<4x48xf32> to vector<4x16xf32>
    %23 = vector.extract_strided_slice %21 {offsets = [0, 0], sizes = [4, 1], strides = [1, 1]} : vector<4x3xf32> to vector<4x1xf32>
    %24 = vector.broadcast %23 : vector<4x1xf32> to vector<4x16xf32>
    %25 = arith.mulf %22, %24 : vector<4x16xf32>
    %cst_10 = arith.constant dense<0.000000e+00> : vector<16xf32>
    %26 = vector.multi_reduction <add>, %25, %cst_10 [0] : vector<4x16xf32> to vector<16xf32>
    %27 = vector.shape_cast %26 : vector<16xf32> to vector<1x16xf32>
    %28 = vector.extract_strided_slice %17 {offsets = [0, 16], sizes = [4, 16], strides = [1, 1]} : vector<4x48xf32> to vector<4x16xf32>
    %29 = vector.extract_strided_slice %21 {offsets = [0, 1], sizes = [4, 1], strides = [1, 1]} : vector<4x3xf32> to vector<4x1xf32>
    %30 = vector.broadcast %29 : vector<4x1xf32> to vector<4x16xf32>
    %31 = arith.mulf %28, %30 : vector<4x16xf32>
    %cst_11 = arith.constant dense<0.000000e+00> : vector<16xf32>
    %32 = vector.multi_reduction <add>, %31, %cst_11 [0] : vector<4x16xf32> to vector<16xf32>
    %33 = vector.shape_cast %32 : vector<16xf32> to vector<1x16xf32>
    %34 = vector.extract_strided_slice %17 {offsets = [0, 32], sizes = [4, 16], strides = [1, 1]} : vector<4x48xf32> to vector<4x16xf32>
    %35 = vector.extract_strided_slice %21 {offsets = [0, 2], sizes = [4, 1], strides = [1, 1]} : vector<4x3xf32> to vector<4x1xf32>
    %36 = vector.broadcast %35 : vector<4x1xf32> to vector<4x16xf32>
    %37 = arith.mulf %34, %36 : vector<4x16xf32>
    %cst_12 = arith.constant dense<0.000000e+00> : vector<16xf32>
    %38 = vector.multi_reduction <add>, %37, %cst_12 [0] : vector<4x16xf32> to vector<16xf32>
    %39 = vector.shape_cast %38 : vector<16xf32> to vector<1x16xf32>
    %40 = tpu.concatenate %27, %33, %39 in 1 : vector<1x16xf32>, vector<1x16xf32>, vector<1x16xf32> -> vector<1x48xf32>
    %c0_13 = arith.constant 0 : index
    %c0_14 = arith.constant 0 : index
    %c0_15 = arith.constant 0 : index
    %41 = vector.load %arg5[%c0_13, %c0_14, %c0_15] : memref<1x1x48xf32, #tpu.memory_space<vmem>>, vector<1x1x48xf32>
    %42 = vector.shape_cast %41 : vector<1x1x48xf32> to vector<1x48xf32>
    %43 = vector.shape_cast %40 : vector<1x48xf32> to vector<1x1x48xf32>
    tpu.vector_store %arg5[%c0_13, %c0_14, %c0_15], %43 {strides = array<i32>} : memref<1x1x48xf32, #tpu.memory_space<vmem>>, vector<1x1x48xf32>,
    return
  }
  func.func @transform_0(%arg0: i32) -> (i32, i32, i32) {
    %c0_i32 = arith.constant 0 : i32
    %c0_i32_0 = arith.constant 0 : i32
    %c0_i32_1 = arith.constant 0 : i32
    return %arg0, %c0_i32, %c0_i32_0 : i32, i32, i32
  }
  func.func @transform_1(%arg0: i32) -> (i32, i32) {
    %c0_i32 = arith.constant 0 : i32
    %c0_i32_0 = arith.constant 0 : i32
    %c0_i32_1 = arith.constant 0 : i32
    return %c0_i32, %c0_i32_0 : i32, i32
  }
  func.func @transform_2(%arg0: i32) -> (i32, i32) {
    %c0_i32 = arith.constant 0 : i32
    %c0_i32_0 = arith.constant 0 : i32
    %c0_i32_1 = arith.constant 0 : i32
    return %c0_i32, %c0_i32_0 : i32, i32
  }
  func.func @transform_3(%arg0: i32) -> (i32, i32) {
    %c0_i32 = arith.constant 0 : i32
    %c0_i32_0 = arith.constant 0 : i32
    %c0_i32_1 = arith.constant 0 : i32
    return %c0_i32, %c0_i32_0 : i32, i32
  }
  func.func @transform_4(%arg0: i32) -> (i32, i32, i32) {
    %c0_i32 = arith.constant 0 : i32
    %c0_i32_0 = arith.constant 0 : i32
    %c0_i32_1 = arith.constant 0 : i32
    return %arg0, %c0_i32, %c0_i32_0 : i32, i32, i32
  }
}

module attributes {stable_mosaic.version = 11 : i64} {
  func.func @_bat_kernel(%arg0: i32, %arg1: memref<16x32xf32, #tpu.memory_space<vmem>>, %arg2: memref<16x1xf32, #tpu.memory_space<vmem>>, %arg3: memref<24x32xf32, #tpu.memory_space<vmem>>, %arg4: memref<24x1xi32, #tpu.memory_space<vmem>>, %arg5: memref<1x1x24xi32, #tpu.memory_space<vmem>>, %arg6: memref<1x32xf32, #tpu.memory_space<vmem>>, %arg7: memref<1x1xf32, #tpu.memory_space<vmem>>, %arg8: memref<16x32xf32, #tpu.memory_space<vmem>>, %arg9: memref<16x32xf32, #tpu.memory_space<vmem>>) attributes {dimension_semantics = [#tpu.dimension_semantics<arbitrary>], iteration_bounds = array<i64: 1>, scalar_prefetch = 0 : i64, scratch_operands = 1 : i64, tpu.core_type = #tpu.core_type<tc>, window_params = [{pipeline_mode = #tpu.pipeline_mode<synchronous>, transform_indices = @transform_0, window_bounds = array<i64: 16, 32>}, {pipeline_mode = #tpu.pipeline_mode<synchronous>, transform_indices = @transform_1, window_bounds = array<i64: 16, 1>}, {transform_indices = @transform_2, window_bounds = array<i64: 24, 32>}, {transform_indices = @transform_3, window_bounds = array<i64: 24, 1>}, {transform_indices = @transform_4, window_bounds = array<i64: 1, 1, 24>}, {pipeline_mode = #tpu.pipeline_mode<synchronous>, transform_indices = @transform_5, window_bounds = array<i64: 1, 32>}, {pipeline_mode = #tpu.pipeline_mode<synchronous>, transform_indices = @transform_6, window_bounds = array<i64: 1, 1>}, {pipeline_mode = #tpu.pipeline_mode<synchronous>, transform_indices = @transform_7, window_bounds = array<i64: 16, 32>}]} {
    %c0_i32 = arith.constant 0 : i32
    %0 = arith.cmpi eq, %arg0, %c0_i32 : i32
    %1 = arith.extui %0 : i1 to i32
    %c0_i32_0 = arith.constant 0 : i32
    %2 = arith.cmpi ne, %1, %c0_i32_0 : i32
    scf.if %2 {
      %c0_20 = arith.constant 0 : index
      %c0_21 = arith.constant 0 : index
      %36 = vector.load %arg1[%c0_20, %c0_21] : memref<16x32xf32, #tpu.memory_space<vmem>>, vector<16x32xf32>
      %cst_22 = arith.constant 1.000000e+00 : f32
      %37 = vector.broadcast %cst_22 : f32 to vector<16x32xf32>
      %38 = arith.mulf %37, %36 : vector<16x32xf32>
      %c0_23 = arith.constant 0 : index
      %c0_24 = arith.constant 0 : index
      %39 = vector.load %arg8[%c0_23, %c0_24] : memref<16x32xf32, #tpu.memory_space<vmem>>, vector<16x32xf32>
      tpu.vector_store %arg8[%c0_23, %c0_24], %38 {strides = array<i32>} : memref<16x32xf32, #tpu.memory_space<vmem>>, vector<16x32xf32>,
      %c0_25 = arith.constant 0 : index
      %c0_26 = arith.constant 0 : index
      %40 = vector.load %arg2[%c0_25, %c0_26] : memref<16x1xf32, #tpu.memory_space<vmem>>, vector<16x1xf32>
      %41 = vector.broadcast %40 : vector<16x1xf32> to vector<16x32xf32>
      %42 = arith.mulf %36, %41 : vector<16x32xf32>
      %c0_27 = arith.constant 0 : index
      %c0_28 = arith.constant 0 : index
      %43 = vector.load %arg9[%c0_27, %c0_28] : memref<16x32xf32, #tpu.memory_space<vmem>>, vector<16x32xf32>
      tpu.vector_store %arg9[%c0_27, %c0_28], %42 {strides = array<i32>} : memref<16x32xf32, #tpu.memory_space<vmem>>, vector<16x32xf32>,
    } else {
    }
    %c0 = arith.constant 0 : index
    %c0_1 = arith.constant 0 : index
    %3 = vector.load %arg3[%c0, %c0_1] : memref<24x32xf32, #tpu.memory_space<vmem>>, vector<24x32xf32>
    %c0_2 = arith.constant 0 : index
    %c0_3 = arith.constant 0 : index
    %4 = vector.load %arg6[%c0_2, %c0_3] : memref<1x32xf32, #tpu.memory_space<vmem>>, vector<1x32xf32>
    %5 = vector.broadcast %4 : vector<1x32xf32> to vector<24x32xf32>
    %6 = arith.mulf %3, %5 : vector<24x32xf32>
    %cst = arith.constant dense<0.000000e+00> : vector<24xf32>
    %7 = vector.multi_reduction <add>, %6, %cst [1] : vector<24x32xf32> to vector<24xf32>
    %8 = vector.shape_cast %7 : vector<24xf32> to vector<24x1xf32>
    %c0_4 = arith.constant 0 : index
    %c0_5 = arith.constant 0 : index
    %9 = vector.load %arg7[%c0_4, %c0_5] : memref<1x1xf32, #tpu.memory_space<vmem>>, vector<1x1xf32>
    %10 = vector.broadcast %9 : vector<1x1xf32> to vector<24x1xf32>
    %11 = arith.addf %8, %10 : vector<24x1xf32>
    %c0_6 = arith.constant 0 : index
    %c0_7 = arith.constant 0 : index
    %12 = vector.load %arg4[%c0_6, %c0_7] : memref<24x1xi32, #tpu.memory_space<vmem>>, vector<24x1xi32>
    %13 = tpu.iota {dimensions = array<i32: 1>} : vector<24x16xi32>
    %14 = vector.broadcast %12 : vector<24x1xi32> to vector<24x16xi32>
    %15 = arith.cmpi eq, %13, %14 : vector<24x16xi32>
    %16 = arith.extui %15 : vector<24x16xi1> to vector<24x16xi32>
    %17 = arith.sitofp %16 : vector<24x16xi32> to vector<24x16xf32>
    %c0_8 = arith.constant 0 : index
    %c0_9 = arith.constant 0 : index
    %18 = vector.load %arg9[%c0_8, %c0_9] : memref<16x32xf32, #tpu.memory_space<vmem>>, vector<16x32xf32>
    %cst_10 = arith.constant dense<0.000000e+00> : vector<24x32xf32>
    %19 = tpu.matmul %17, %18, %cst_10 {dimension_numbers = #tpu.dot_dimension_numbers<[1], [0], [0], [1], [0, 0, 1, 1], [], []>} : vector<24x16xf32>, vector<16x32xf32>, vector<24x32xf32> -> vector<24x32xf32>
    %20 = vector.broadcast %11 : vector<24x1xf32> to vector<24x32xf32>
    %21 = arith.mulf %20, %3 : vector<24x32xf32>
    %22 = arith.addf %19, %21 : vector<24x32xf32>
    %cst_11 = arith.constant 0.000000e+00 : f32
    %23 = vector.broadcast %cst_11 : f32 to vector<24x32xf32>
    %24 = arith.maximumf %22, %23 : vector<24x32xf32>
    %c0_12 = arith.constant 0 : index
    %c0_13 = arith.constant 0 : index
    %c0_14 = arith.constant 0 : index
    %25 = vector.load %arg5[%c0_12, %c0_13, %c0_14] : memref<1x1x24xi32, #tpu.memory_space<vmem>>, vector<1x1x24xi32>
    %26 = vector.shape_cast %25 : vector<1x1x24xi32> to vector<1x24xi32>
    %27 = tpu.iota {dimensions = array<i32: 0>} : vector<16x24xi32>
    %28 = vector.broadcast %26 : vector<1x24xi32> to vector<16x24xi32>
    %29 = arith.cmpi eq, %27, %28 : vector<16x24xi32>
    %30 = arith.extui %29 : vector<16x24xi1> to vector<16x24xi32>
    %31 = arith.sitofp %30 : vector<16x24xi32> to vector<16x24xf32>
    %c0_15 = arith.constant 0 : index
    %c0_16 = arith.constant 0 : index
    %32 = vector.load %arg8[%c0_15, %c0_16] : memref<16x32xf32, #tpu.memory_space<vmem>>, vector<16x32xf32>
    %cst_17 = arith.constant dense<0.000000e+00> : vector<16x32xf32>
    %33 = tpu.matmul %31, %24, %cst_17 {dimension_numbers = #tpu.dot_dimension_numbers<[1], [0], [0], [1], [0, 0, 1, 1], [], []>} : vector<16x24xf32>, vector<24x32xf32>, vector<16x32xf32> -> vector<16x32xf32>
    %34 = arith.addf %32, %33 : vector<16x32xf32>
    %c0_18 = arith.constant 0 : index
    %c0_19 = arith.constant 0 : index
    %35 = vector.load %arg8[%c0_18, %c0_19] : memref<16x32xf32, #tpu.memory_space<vmem>>, vector<16x32xf32>
    tpu.vector_store %arg8[%c0_18, %c0_19], %34 {strides = array<i32>} : memref<16x32xf32, #tpu.memory_space<vmem>>, vector<16x32xf32>,
    return
  }
  func.func @transform_0(%arg0: i32) -> (i32, i32) {
    %c0_i32 = arith.constant 0 : i32
    %c0_i32_0 = arith.constant 0 : i32
    %c0_i32_1 = arith.constant 0 : i32
    return %c0_i32, %c0_i32_0 : i32, i32
  }
  func.func @transform_1(%arg0: i32) -> (i32, i32) {
    %c0_i32 = arith.constant 0 : i32
    %c0_i32_0 = arith.constant 0 : i32
    %c0_i32_1 = arith.constant 0 : i32
    return %c0_i32, %c0_i32_0 : i32, i32
  }
  func.func @transform_2(%arg0: i32) -> (i32, i32) {
    %c0_i32 = arith.constant 0 : i32
    %c0_i32_0 = arith.constant 0 : i32
    return %arg0, %c0_i32 : i32, i32
  }
  func.func @transform_3(%arg0: i32) -> (i32, i32) {
    %c0_i32 = arith.constant 0 : i32
    %c0_i32_0 = arith.constant 0 : i32
    return %arg0, %c0_i32 : i32, i32
  }
  func.func @transform_4(%arg0: i32) -> (i32, i32, i32) {
    %c0_i32 = arith.constant 0 : i32
    %c0_i32_0 = arith.constant 0 : i32
    %c0_i32_1 = arith.constant 0 : i32
    return %arg0, %c0_i32, %c0_i32_0 : i32, i32, i32
  }
  func.func @transform_5(%arg0: i32) -> (i32, i32) {
    %c0_i32 = arith.constant 0 : i32
    %c0_i32_0 = arith.constant 0 : i32
    %c0_i32_1 = arith.constant 0 : i32
    return %c0_i32, %c0_i32_0 : i32, i32
  }
  func.func @transform_6(%arg0: i32) -> (i32, i32) {
    %c0_i32 = arith.constant 0 : i32
    %c0_i32_0 = arith.constant 0 : i32
    %c0_i32_1 = arith.constant 0 : i32
    return %c0_i32, %c0_i32_0 : i32, i32
  }
  func.func @transform_7(%arg0: i32) -> (i32, i32) {
    %c0_i32 = arith.constant 0 : i32
    %c0_i32_0 = arith.constant 0 : i32
    %c0_i32_1 = arith.constant 0 : i32
    return %c0_i32, %c0_i32_0 : i32, i32
  }
}

module attributes {stable_mosaic.version = 11 : i64} {
  func.func @_linear_kernel(%arg0: i32, %arg1: memref<16x32xf32, #tpu.memory_space<vmem>>, %arg2: memref<32x32xf32, #tpu.memory_space<vmem>>, %arg3: memref<1x32xf32, #tpu.memory_space<vmem>>, %arg4: memref<16x32xf32, #tpu.memory_space<vmem>>) attributes {dimension_semantics = [#tpu.dimension_semantics<parallel>], iteration_bounds = array<i64: 1>, scalar_prefetch = 0 : i64, scratch_operands = 0 : i64, tpu.core_type = #tpu.core_type<tc>, window_params = [{transform_indices = @transform_0, window_bounds = array<i64: 16, 32>}, {pipeline_mode = #tpu.pipeline_mode<synchronous>, transform_indices = @transform_1, window_bounds = array<i64: 32, 32>}, {pipeline_mode = #tpu.pipeline_mode<synchronous>, transform_indices = @transform_2, window_bounds = array<i64: 1, 32>}, {transform_indices = @transform_3, window_bounds = array<i64: 16, 32>}]} {
    %c0 = arith.constant 0 : index
    %c0_0 = arith.constant 0 : index
    %0 = vector.load %arg1[%c0, %c0_0] : memref<16x32xf32, #tpu.memory_space<vmem>>, vector<16x32xf32>
    %c0_1 = arith.constant 0 : index
    %c0_2 = arith.constant 0 : index
    %1 = vector.load %arg2[%c0_1, %c0_2] : memref<32x32xf32, #tpu.memory_space<vmem>>, vector<32x32xf32>
    %cst = arith.constant dense<0.000000e+00> : vector<16x32xf32>
    %2 = tpu.matmul %0, %1, %cst {dimension_numbers = #tpu.dot_dimension_numbers<[1], [0], [0], [1], [0, 0, 1, 1], [], []>} : vector<16x32xf32>, vector<32x32xf32>, vector<16x32xf32> -> vector<16x32xf32>
    %c0_3 = arith.constant 0 : index
    %c0_4 = arith.constant 0 : index
    %3 = vector.load %arg3[%c0_3, %c0_4] : memref<1x32xf32, #tpu.memory_space<vmem>>, vector<1x32xf32>
    %4 = vector.broadcast %3 : vector<1x32xf32> to vector<16x32xf32>
    %5 = arith.addf %2, %4 : vector<16x32xf32>
    %cst_5 = arith.constant 0.000000e+00 : f32
    %6 = vector.broadcast %cst_5 : f32 to vector<16x32xf32>
    %7 = arith.maximumf %5, %6 : vector<16x32xf32>
    %c0_6 = arith.constant 0 : index
    %c0_7 = arith.constant 0 : index
    %8 = vector.load %arg4[%c0_6, %c0_7] : memref<16x32xf32, #tpu.memory_space<vmem>>, vector<16x32xf32>
    tpu.vector_store %arg4[%c0_6, %c0_7], %7 {strides = array<i32>} : memref<16x32xf32, #tpu.memory_space<vmem>>, vector<16x32xf32>,
    return
  }
  func.func @transform_0(%arg0: i32) -> (i32, i32) {
    %c0_i32 = arith.constant 0 : i32
    %c0_i32_0 = arith.constant 0 : i32
    return %arg0, %c0_i32 : i32, i32
  }
  func.func @transform_1(%arg0: i32) -> (i32, i32) {
    %c0_i32 = arith.constant 0 : i32
    %c0_i32_0 = arith.constant 0 : i32
    %c0_i32_1 = arith.constant 0 : i32
    return %c0_i32, %c0_i32_0 : i32, i32
  }
  func.func @transform_2(%arg0: i32) -> (i32, i32) {
    %c0_i32 = arith.constant 0 : i32
    %c0_i32_0 = arith.constant 0 : i32
    %c0_i32_1 = arith.constant 0 : i32
    return %c0_i32, %c0_i32_0 : i32, i32
  }
  func.func @transform_3(%arg0: i32) -> (i32, i32) {
    %c0_i32 = arith.constant 0 : i32
    %c0_i32_0 = arith.constant 0 : i32
    return %arg0, %c0_i32 : i32, i32
  }
}

module attributes {stable_mosaic.version = 11 : i64} {
  func.func @_readout_kernel(%arg0: i32, %arg1: memref<12x32xf32, #tpu.memory_space<vmem>>, %arg2: memref<2x12xf32, #tpu.memory_space<vmem>>, %arg3: memref<2x16xf32, #tpu.memory_space<vmem>>, %arg4: memref<16x32xf32, #tpu.memory_space<vmem>>, %arg5: memref<32x32xf32, #tpu.memory_space<vmem>>, %arg6: memref<1x32xf32, #tpu.memory_space<vmem>>, %arg7: memref<32x5xf32, #tpu.memory_space<vmem>>, %arg8: memref<32x5xf32, #tpu.memory_space<vmem>>, %arg9: memref<1x5xf32, #tpu.memory_space<vmem>>, %arg10: memref<2x5xf32, #tpu.memory_space<vmem>>, %arg11: memref<2x32xf32, #tpu.memory_space<vmem>>, %arg12: memref<2x1xf32, #tpu.memory_space<vmem>>) attributes {dimension_semantics = [#tpu.dimension_semantics<arbitrary>], iteration_bounds = array<i64: 1>, scalar_prefetch = 0 : i64, scratch_operands = 2 : i64, tpu.core_type = #tpu.core_type<tc>, window_params = [{pipeline_mode = #tpu.pipeline_mode<synchronous>, transform_indices = @transform_0, window_bounds = array<i64: 12, 32>}, {pipeline_mode = #tpu.pipeline_mode<synchronous>, transform_indices = @transform_1, window_bounds = array<i64: 2, 12>}, {transform_indices = @transform_2, window_bounds = array<i64: 2, 16>}, {transform_indices = @transform_3, window_bounds = array<i64: 16, 32>}, {pipeline_mode = #tpu.pipeline_mode<synchronous>, transform_indices = @transform_4, window_bounds = array<i64: 32, 32>}, {pipeline_mode = #tpu.pipeline_mode<synchronous>, transform_indices = @transform_5, window_bounds = array<i64: 1, 32>}, {pipeline_mode = #tpu.pipeline_mode<synchronous>, transform_indices = @transform_6, window_bounds = array<i64: 32, 5>}, {pipeline_mode = #tpu.pipeline_mode<synchronous>, transform_indices = @transform_7, window_bounds = array<i64: 32, 5>}, {pipeline_mode = #tpu.pipeline_mode<synchronous>, transform_indices = @transform_8, window_bounds = array<i64: 1, 5>}, {pipeline_mode = #tpu.pipeline_mode<synchronous>, transform_indices = @transform_9, window_bounds = array<i64: 2, 5>}]} {
    %c0_i32 = arith.constant 0 : i32
    %0 = arith.cmpi eq, %arg0, %c0_i32 : i32
    %1 = arith.extui %0 : i1 to i32
    %c0_i32_0 = arith.constant 0 : i32
    %2 = arith.cmpi ne, %1, %c0_i32_0 : i32
    scf.if %2 {
      %cst_15 = arith.constant 0.000000e+00 : f32
      %17 = vector.broadcast %cst_15 : f32 to vector<2x32xf32>
      %c0_16 = arith.constant 0 : index
      %c0_17 = arith.constant 0 : index
      %18 = vector.load %arg11[%c0_16, %c0_17] : memref<2x32xf32, #tpu.memory_space<vmem>>, vector<2x32xf32>
      tpu.vector_store %arg11[%c0_16, %c0_17], %17 {strides = array<i32>} : memref<2x32xf32, #tpu.memory_space<vmem>>, vector<2x32xf32>,
      %cst_18 = arith.constant 0.000000e+00 : f32
      %19 = vector.broadcast %cst_18 : f32 to vector<2x1xf32>
      %c0_19 = arith.constant 0 : index
      %c0_20 = arith.constant 0 : index
      %20 = vector.load %arg12[%c0_19, %c0_20] : memref<2x1xf32, #tpu.memory_space<vmem>>, vector<2x1xf32>
      tpu.vector_store %arg12[%c0_19, %c0_20], %19 {strides = array<i32>} : memref<2x1xf32, #tpu.memory_space<vmem>>, vector<2x1xf32>,
    } else {
    }
    %c0 = arith.constant 0 : index
    %c0_1 = arith.constant 0 : index
    %3 = vector.load %arg3[%c0, %c0_1] : memref<2x16xf32, #tpu.memory_space<vmem>>, vector<2x16xf32>
    %c0_2 = arith.constant 0 : index
    %c0_3 = arith.constant 0 : index
    %4 = vector.load %arg11[%c0_2, %c0_3] : memref<2x32xf32, #tpu.memory_space<vmem>>, vector<2x32xf32>
    %c0_4 = arith.constant 0 : index
    %c0_5 = arith.constant 0 : index
    %5 = vector.load %arg4[%c0_4, %c0_5] : memref<16x32xf32, #tpu.memory_space<vmem>>, vector<16x32xf32>
    %cst = arith.constant dense<0.000000e+00> : vector<2x32xf32>
    %6 = tpu.matmul %3, %5, %cst {dimension_numbers = #tpu.dot_dimension_numbers<[1], [0], [0], [1], [0, 0, 1, 1], [], []>} : vector<2x16xf32>, vector<16x32xf32>, vector<2x32xf32> -> vector<2x32xf32>
    %7 = arith.addf %4, %6 : vector<2x32xf32>
    %c0_6 = arith.constant 0 : index
    %c0_7 = arith.constant 0 : index
    %8 = vector.load %arg11[%c0_6, %c0_7] : memref<2x32xf32, #tpu.memory_space<vmem>>, vector<2x32xf32>
    tpu.vector_store %arg11[%c0_6, %c0_7], %7 {strides = array<i32>} : memref<2x32xf32, #tpu.memory_space<vmem>>, vector<2x32xf32>,
    %c0_8 = arith.constant 0 : index
    %c0_9 = arith.constant 0 : index
    %9 = vector.load %arg12[%c0_8, %c0_9] : memref<2x1xf32, #tpu.memory_space<vmem>>, vector<2x1xf32>
    %cst_10 = arith.constant dense<0.000000e+00> : vector<2xf32>
    %10 = vector.multi_reduction <add>, %3, %cst_10 [1] : vector<2x16xf32> to vector<2xf32>
    %11 = vector.shape_cast %10 : vector<2xf32> to vector<2x1xf32>
    %12 = arith.addf %9, %11 : vector<2x1xf32>
    %c0_11 = arith.constant 0 : index
    %c0_12 = arith.constant 0 : index
    %13 = vector.load %arg12[%c0_11, %c0_12] : memref<2x1xf32, #tpu.memory_space<vmem>>, vector<2x1xf32>
    tpu.vector_store %arg12[%c0_11, %c0_12], %12 {strides = array<i32>} : memref<2x1xf32, #tpu.memory_space<vmem>>, vector<2x1xf32>,
    %c0_i32_13 = arith.constant 0 : i32
    %14 = arith.cmpi eq, %arg0, %c0_i32_13 : i32
    %15 = arith.extui %14 : i1 to i32
    %c0_i32_14 = arith.constant 0 : i32
    %16 = arith.cmpi ne, %15, %c0_i32_14 : i32
    scf.if %16 {
      %c0_15 = arith.constant 0 : index
      %c0_16 = arith.constant 0 : index
      %17 = vector.load %arg2[%c0_15, %c0_16] : memref<2x12xf32, #tpu.memory_space<vmem>>, vector<2x12xf32>
      %cst_17 = arith.constant dense<0.000000e+00> : vector<2xf32>
      %18 = vector.multi_reduction <add>, %17, %cst_17 [1] : vector<2x12xf32> to vector<2xf32>
      %19 = vector.shape_cast %18 : vector<2xf32> to vector<2x1xf32>
      %c0_18 = arith.constant 0 : index
      %c0_19 = arith.constant 0 : index
      %20 = vector.load %arg1[%c0_18, %c0_19] : memref<12x32xf32, #tpu.memory_space<vmem>>, vector<12x32xf32>
      %cst_20 = arith.constant dense<0.000000e+00> : vector<2x32xf32>
      %21 = tpu.matmul %17, %20, %cst_20 {dimension_numbers = #tpu.dot_dimension_numbers<[1], [0], [0], [1], [0, 0, 1, 1], [], []>} : vector<2x12xf32>, vector<12x32xf32>, vector<2x32xf32> -> vector<2x32xf32>
      %22 = vector.broadcast %19 : vector<2x1xf32> to vector<2x32xf32>
      %23 = arith.divf %21, %22 : vector<2x32xf32>
      %c0_21 = arith.constant 0 : index
      %c0_22 = arith.constant 0 : index
      %24 = vector.load %arg11[%c0_21, %c0_22] : memref<2x32xf32, #tpu.memory_space<vmem>>, vector<2x32xf32>
      %c0_23 = arith.constant 0 : index
      %c0_24 = arith.constant 0 : index
      %25 = vector.load %arg12[%c0_23, %c0_24] : memref<2x1xf32, #tpu.memory_space<vmem>>, vector<2x1xf32>
      %26 = vector.broadcast %25 : vector<2x1xf32> to vector<2x32xf32>
      %27 = arith.divf %24, %26 : vector<2x32xf32>
      %c0_25 = arith.constant 0 : index
      %c0_26 = arith.constant 0 : index
      %28 = vector.load %arg5[%c0_25, %c0_26] : memref<32x32xf32, #tpu.memory_space<vmem>>, vector<32x32xf32>
      %cst_27 = arith.constant dense<0.000000e+00> : vector<2x32xf32>
      %29 = tpu.matmul %27, %28, %cst_27 {dimension_numbers = #tpu.dot_dimension_numbers<[1], [0], [0], [1], [0, 0, 1, 1], [], []>} : vector<2x32xf32>, vector<32x32xf32>, vector<2x32xf32> -> vector<2x32xf32>
      %c0_28 = arith.constant 0 : index
      %c0_29 = arith.constant 0 : index
      %30 = vector.load %arg6[%c0_28, %c0_29] : memref<1x32xf32, #tpu.memory_space<vmem>>, vector<1x32xf32>
      %31 = vector.broadcast %30 : vector<1x32xf32> to vector<2x32xf32>
      %32 = arith.addf %29, %31 : vector<2x32xf32>
      %c0_30 = arith.constant 0 : index
      %c0_31 = arith.constant 0 : index
      %33 = vector.load %arg7[%c0_30, %c0_31] : memref<32x5xf32, #tpu.memory_space<vmem>>, vector<32x5xf32>
      %cst_32 = arith.constant dense<0.000000e+00> : vector<2x5xf32>
      %34 = tpu.matmul %23, %33, %cst_32 {dimension_numbers = #tpu.dot_dimension_numbers<[1], [0], [0], [1], [0, 0, 1, 1], [], []>} : vector<2x32xf32>, vector<32x5xf32>, vector<2x5xf32> -> vector<2x5xf32>
      %c0_33 = arith.constant 0 : index
      %c0_34 = arith.constant 0 : index
      %35 = vector.load %arg8[%c0_33, %c0_34] : memref<32x5xf32, #tpu.memory_space<vmem>>, vector<32x5xf32>
      %cst_35 = arith.constant dense<0.000000e+00> : vector<2x5xf32>
      %36 = tpu.matmul %32, %35, %cst_35 {dimension_numbers = #tpu.dot_dimension_numbers<[1], [0], [0], [1], [0, 0, 1, 1], [], []>} : vector<2x32xf32>, vector<32x5xf32>, vector<2x5xf32> -> vector<2x5xf32>
      %37 = arith.addf %34, %36 : vector<2x5xf32>
      %c0_36 = arith.constant 0 : index
      %c0_37 = arith.constant 0 : index
      %38 = vector.load %arg9[%c0_36, %c0_37] : memref<1x5xf32, #tpu.memory_space<vmem>>, vector<1x5xf32>
      %39 = vector.broadcast %38 : vector<1x5xf32> to vector<2x5xf32>
      %40 = arith.addf %37, %39 : vector<2x5xf32>
      %c0_38 = arith.constant 0 : index
      %c0_39 = arith.constant 0 : index
      %41 = vector.load %arg10[%c0_38, %c0_39] : memref<2x5xf32, #tpu.memory_space<vmem>>, vector<2x5xf32>
      tpu.vector_store %arg10[%c0_38, %c0_39], %40 {strides = array<i32>} : memref<2x5xf32, #tpu.memory_space<vmem>>, vector<2x5xf32>,
    } else {
    }
    return
  }
  func.func @transform_0(%arg0: i32) -> (i32, i32) {
    %c0_i32 = arith.constant 0 : i32
    %c0_i32_0 = arith.constant 0 : i32
    %c0_i32_1 = arith.constant 0 : i32
    return %c0_i32, %c0_i32_0 : i32, i32
  }
  func.func @transform_1(%arg0: i32) -> (i32, i32) {
    %c0_i32 = arith.constant 0 : i32
    %c0_i32_0 = arith.constant 0 : i32
    %c0_i32_1 = arith.constant 0 : i32
    return %c0_i32, %c0_i32_0 : i32, i32
  }
  func.func @transform_2(%arg0: i32) -> (i32, i32) {
    %c0_i32 = arith.constant 0 : i32
    %c0_i32_0 = arith.constant 0 : i32
    return %c0_i32, %arg0 : i32, i32
  }
  func.func @transform_3(%arg0: i32) -> (i32, i32) {
    %c0_i32 = arith.constant 0 : i32
    %c0_i32_0 = arith.constant 0 : i32
    return %arg0, %c0_i32 : i32, i32
  }
  func.func @transform_4(%arg0: i32) -> (i32, i32) {
    %c0_i32 = arith.constant 0 : i32
    %c0_i32_0 = arith.constant 0 : i32
    %c0_i32_1 = arith.constant 0 : i32
    return %c0_i32, %c0_i32_0 : i32, i32
  }
  func.func @transform_5(%arg0: i32) -> (i32, i32) {
    %c0_i32 = arith.constant 0 : i32
    %c0_i32_0 = arith.constant 0 : i32
    %c0_i32_1 = arith.constant 0 : i32
    return %c0_i32, %c0_i32_0 : i32, i32
  }
  func.func @transform_6(%arg0: i32) -> (i32, i32) {
    %c0_i32 = arith.constant 0 : i32
    %c0_i32_0 = arith.constant 0 : i32
    %c0_i32_1 = arith.constant 0 : i32
    return %c0_i32, %c0_i32_0 : i32, i32
  }
  func.func @transform_7(%arg0: i32) -> (i32, i32) {
    %c0_i32 = arith.constant 0 : i32
    %c0_i32_0 = arith.constant 0 : i32
    %c0_i32_1 = arith.constant 0 : i32
    return %c0_i32, %c0_i32_0 : i32, i32
  }
  func.func @transform_8(%arg0: i32) -> (i32, i32) {
    %c0_i32 = arith.constant 0 : i32
    %c0_i32_0 = arith.constant 0 : i32
    %c0_i32_1 = arith.constant 0 : i32
    return %c0_i32, %c0_i32_0 : i32, i32
  }
  func.func @transform_9(%arg0: i32) -> (i32, i32) {
    %c0_i32 = arith.constant 0 : i32
    %c0_i32_0 = arith.constant 0 : i32
    %c0_i32_1 = arith.constant 0 : i32
    return %c0_i32, %c0_i32_0 : i32, i32
  }
}

</mosaic_0001>

<bundles_post_ra>
// kernel: graphcare_forward.12
= control target key start
LH: loop header
LB: loop body
LE: loop exit
PB: predicated region body
PF: predicated region fallthrough
CT: control target
= control target key end

     0   :  { %vm27_vm0 = vcmask 261120   ;;  %s188_s1 = inlined_call_operand.vmem [shape: f32[32,32], index: 1, kind: input, shape index: {}]   ;;  %s189_s0 = inlined_call_operand.vmem [shape: f32[16,32], index: 0, kind: input, shape index: {}]   ;;  %s190_s2 = inlined_call_operand.vmem [shape: f32[1,32], index: 2, kind: input, shape index: {}]   ;;  %s191_s3 = inlined_call_operand.vmem [shape: f32[16,32], index: 3, kind: output, shape index: {}]  }
   0x1   :  { %v19_v0 = vld [vmem:[%s188_s1 + $0x18] sm:$0xff]  ;;  %v18_v1 = vld [vmem:[%s188_s1 + $0x10] sm:$0xff]  ;;  %v14_v2 = vld [vmem:[%s189_s0] sm:$0xff] }
   0x2   :  { %126 = vmatprep.subr.mxu0 %v19_v0  ;;  %v17_v3 = vld [vmem:[%s188_s1 + $0x8] sm:$0xff]  ;;  %134 = vmatprep.mubr.msk.f32.mxu0 %vm27_vm0, %v14_v2  ;;  %v16_v4 = vld [vmem:[%s188_s1] sm:$0xff] }
   0x3   :  { %127 = vmatpush3.msra.mxu0 %v19_v0  ;;  %v15_v5 = vld [vmem:[%s189_s0 + $0x8] sm:$0xff]  ;;  %v117_v6 = vld [vmem:[%s190_s2] ss:$0 sm:$0xff] }
   0x4   :  { %128 = vmatprep.subr.mxu0 %v18_v1 }
   0x5   :  { %129 = vmatpush3.msra.mxu0 %v18_v1 }
   0x6   :  { %130 = vmatprep.subr.mxu0 %v17_v3 }
   0x7   :  { %131 = vmatpush3.msra.mxu0 %v17_v3 }
   0x8   :  { %132 = vmatprep.subr.mxu0 %v16_v4 }
   0x9   :  { %133 = vmatpush3.msra.mxu0 %v16_v4 }
   0xa   :  { %135 = vmatmul.mubr.msk.f32.vlgmr.msra.gmra.mxu0 %vm27_vm0, %v15_v5 }
  0xca   :  { %v136_v7 = vpop.f32.mrf.mxu0 }
  0xcb   :  { %v106_v8 = vadd.f32 %v136_v7, %v117_v6 }
  0xcc   :  { %v100_v9 = vpop.f32.mrf.mxu0 }
  0xcd   :  { %v110_v10 = vmax.f32 %v106_v8, 0.0  ;;  %v101_v11 = vadd.f32 %v117_v6, %v100_v9 }
  0xcf   :  { %112 = vst.msk [vmem:[%s191_s3 + $0x8] sm:$0xff] %vm27_vm0, %v110_v10  ;;  %v109_v12 = vmax.f32 %v101_v11, 0.0 }
  0xd1   :  { %111 = vst.msk [vmem:[%s191_s3] sm:$0xff] %vm27_vm0, %v109_v12 }

// kernel: graphcare_forward.9
= control target key start
LH: loop header
LB: loop body
LE: loop exit
PB: predicated region body
PF: predicated region fallthrough
CT: control target
= control target key end

     0   :  { %v193_v0 = vmov 0.0   ;;  %vm30_vm0 = vcmask 261120   ;;  %vm194_vm1 = vmmov 0   ;;  %s270_s1 = inlined_call_operand.vmem [shape: f32[32,32], index: 1, kind: input, shape index: {}]   ;;  %s271_s0 = inlined_call_operand.vmem [shape: f32[40,32], index: 0, kind: input, shape index: {}]   ;;  %s272_s2 = inlined_call_operand.vmem [shape: f32[1,32], index: 2, kind: input, shape index: {}]   ;;  %s273_s3 = inlined_call_operand.vmem [shape: f32[40,32], index: 3, kind: output, shape index: {}]  }
   0x1   :  { %160 = vmatprep.subr.mxu0 %v193_v0  ;;  %v22_v1 = vld [vmem:[%s270_s1 + $0x18] sm:$0xff]  ;;  %183 = vmatprep.subr.mxu1 %v193_v0  ;;  %v21_v2 = vld [vmem:[%s270_s1 + $0x10] sm:$0xff]  ;;  %v20_v3 = vld [vmem:[%s270_s1 + $0x8] sm:$0xff] }
   0x2   :  { %161 = vmatpush3.msra.mxu0 %v22_v1  ;;  %187 = vmatpush3.msra.mxu1 %v22_v1  ;;  %v19_v4 = vld [vmem:[%s270_s1] sm:$0xff]  ;;  %v17_v6 = vld [vmem:[%s271_s0 + $0x18] sm:$0xff]  ;;  %v15_v7 = vld [vmem:[%s271_s0 + $0x8] sm:$0xff] }
   0x3   :  { %162 = vmatprep.subr.mxu0 %v193_v0  ;;  %184 = vmatprep.subr.mxu1 %v193_v0  ;;  %v14_v5 = vld [vmem:[%s271_s0] sm:$0xff]  ;;  %v16_v9 = vld [vmem:[%s271_s0 + $0x10] sm:$0xff] }
   0x4   :  { %163 = vmatpush3.msra.mxu0 %v21_v2  ;;  %188 = vmatpush3.msra.mxu1 %v21_v2  ;;  %v18_v8 = vld [vmem:[%s271_s0 + $0x20] sm:$0xff] }
   0x5   :  { %164 = vmatprep.subr.mxu0 %v193_v0  ;;  %185 = vmatprep.subr.mxu1 %v193_v0  ;;  %v145_v10 = vld [vmem:[%s272_s2] ss:$0 sm:$0xff] }
   0x6   :  { %165 = vmatpush3.msra.mxu0 %v20_v3  ;;  %189 = vmatpush3.msra.mxu1 %v20_v3 }
   0x7   :  { %166 = vmatprep.subr.mxu0 %v193_v0  ;;  %168 = vmatprep.mubr.msk.f32.mxu0 %vm194_vm1, %v193_v0 }
   0x8   :  { %167 = vmatpush3.msra.mxu0 %v19_v4  ;;  %186 = vmatprep.subr.mxu1 %v193_v0 }
   0x9   :  { %169 = vmatmul.mubr.msk.f32.vlgmr.msra.gmra.mxu0 %vm30_vm0, %v14_v5  ;;  %190 = vmatpush3.msra.mxu1 %v19_v4 }
   0xa   :  { %177 = vmatprep.mubr.msk.f32.mxu1 %vm194_vm1, %v193_v0  ;;  %171 = vmatprep.mubr.msk.f32.mxu0 %vm194_vm1, %v193_v0 }
   0xb   :  { %178 = vmatmul.mubr.msk.f32.vlgmr.msra.gmra.mxu1 %vm30_vm0, %v17_v6 }
   0xc   :  { %180 = vmatprep.mubr.msk.f32.mxu1 %vm194_vm1, %v193_v0 }
   0xd   :  { %172 = vmatmul.mubr.msk.f32.gmra.mxu0 %vm30_vm0, %v15_v7 }
   0xe   :  { %174 = vmatprep.mubr.msk.f32.mxu0 %vm194_vm1, %v193_v0 }
   0xf   :  { %181 = vmatmul.mubr.msk.f32.gmra.mxu1 %vm30_vm0, %v18_v8 }
  0x11   :  { %175 = vmatmul.mubr.msk.f32.gmra.mxu0 %vm30_vm0, %v16_v9 }
  0xc9   :  { %v112_v11 = vpop.f32.mrf.mxu0 }
  0xca   :  { %v113_v12 = vadd.f32 %v145_v10, %v112_v11 }
  0xcb   :  { %v170_v13 = vpop.f32.mrf.mxu0  ;;  %v127_v14 = vpop.f32.mrf.mxu1 }
  0xcc   :  { %136 = vst.msk [vmem:[%s273_s3] sm:$0xff] %vm30_vm0, %v113_v12  ;;  %v128_v15 = vadd.f32 %v145_v10, %v127_v14 }
  0xcd   :  { %v117_v16 = vpop.f32.mrf.mxu0  ;;  %v179_v17 = vpop.f32.mrf.mxu1 }
  0xce   :  { %139 = vst.msk [vmem:[%s273_s3 + $0x18] sm:$0xff] %vm30_vm0, %v128_v15  ;;  %v118_v18 = vadd.f32 %v145_v10, %v117_v16 }
  0xcf   :  { %v173_v19 = vpop.f32.mrf.mxu0  ;;  %v132_v20 = vpop.f32.mrf.mxu1 }
  0xd0   :  { %137 = vst.msk [vmem:[%s273_s3 + $0x8] sm:$0xff] %vm30_vm0, %v118_v18  ;;  %v133_v21 = vadd.f32 %v145_v10, %v132_v20 }
  0xd1   :  { %v122_v22 = vpop.f32.mrf.mxu0  ;;  %v182_v23 = vpop.f32.mrf.mxu1 }
  0xd2   :  { %140 = vst.msk [vmem:[%s273_s3 + $0x20] sm:$0xff] %vm30_vm0, %v133_v21  ;;  %v123_v24 = vadd.f32 %v145_v10, %v122_v22 }
  0xd3   :  { %v176_v25 = vpop.f32.mrf.mxu0 }
  0xd4   :  { %138 = vst.msk [vmem:[%s273_s3 + $0x10] sm:$0xff] %vm30_vm0, %v123_v24 }

// kernel: graphcare_forward.10
= control target key start
LH: loop header
LB: loop body
LE: loop exit
PB: predicated region body
PF: predicated region fallthrough
CT: control target
= control target key end

     0   :  { %s479_s15 = smov 0   ;;  %s514_s0 = inlined_call_operand.vmem [shape: f32[2,4,16], index: 0, kind: input, shape index: {}]   ;;  %s515_s1 = inlined_call_operand.vmem [shape: f32[16,51], index: 1, kind: input, shape index: {}]   ;;  %s516_s2 = inlined_call_operand.vmem [shape: f32[1,51], index: 2, kind: input, shape index: {}]   ;;  %s517_s3 = inlined_call_operand.vmem [shape: f32[4,1], index: 3, kind: input, shape index: {}]   ;;  %s518_s4 = inlined_call_operand.vmem [shape: f32[2,1,48], index: 4, kind: output, shape index: {}]  }
   0x1 LB: > { %s395_s16 = sadd.s32 4294967295, %s446_s15   ;;  %p399_p0 = scmp.ge.s32.totalorder %s446_s15, 1  ;;  %s446_s15 = sphi %s479_s15, %s14_s15  }
   0x2   : > { %p161_p1 = scmp.lt.s32.totalorder %s446_s15, 3 }
   0x4   : > { %p162_p2 = pnand %p399_p0, %p161_p1 }
   0x5   : > { %p184_p3 = scmp.lt.s32.totalorder (!%p162_p2), %s395_s16, 1 }
   0x6   : > { %165 = sbr.rel (%p162_p2) target bundleno = 373 (0x175), region = 36 }
   0xb   : > { %v193_v0 = vld [vmem:[%s515_s1 + $0x8] sm:$0xff]  ;;  %v448_v1 = vmov 0.0   ;;  %v192_v2 = vld [vmem:[%s515_s1] sm:$0xff]  ;;  %vm449_vm0 = vmmov 0   ;;  %s520_s16 = smov (!%p184_p3, %s395_s16), 1  ;;  %v450_v4 = vmov 0  }
   0xc   : > { %408 = vmatprep.subr.mxu0 %v448_v1  ;;  %412 = vmatprep.mubr.msk.f32.mxu0 %vm449_vm0, %v448_v1  ;;  %v296_v3 = vld [vmem:[%s517_s3] sm:$0xf]  ;;  %s400_s23 = sshll.u32 %s520_s16, 2  ;;  %vm201_vm1 = vcmask 130048   ;;  %v451_v6 = vmov 49   ;;  %v452_v7 = vmov 48   ;;  %s190_s5 = scalar_lea.vmem %s518_s4, %s520_s16 }
   0xd   : > { %409 = vmatpush3.msra.mxu0 %v193_v0  ;;  %429 = vset.pattern.permute.xlu0 %v450_v4  ;;  %s187_s26 = scalar_lea.vmem %s514_s0, %s400_s23  ;;  %v401_v8 = vld [vmem:[%s516_s2] ss:$0 sm:$0xff]  ;;  %v453_v15 = vmov 50   ;;  %vm275_vm2 = vcmask 388096   ;;  %vm322_vm3 = vcmask 257152   ;;  %vm309_vm4 = vcmask 125952  }
   0xe   : > { %410 = vmatprep.subr.mxu0 %v448_v1  ;;  %299 = vperm.xlu0 %429, %v296_v3   ;;  %v191_v5 = vld [vmem:[%s187_s26] sm:$0xf]  ;;  %vm335_vm5 = vcmask 388352   ;;  %vm344_vm6 = vcmask 261120   ;;  %vm346_vm7 = vcmask 385024  }
   0xf   : > { %411 = vmatpush3.msra.mxu0 %v192_v2  ;;  %431 = vset.pattern.permute.xlu1 %v451_v6 }
  0x10   : > { %413 = vmatmul.mubr.msk.f32.vlgmr.msra.gmra.mxu0 %vm201_vm1, %v191_v5 }
  0x12   : > { %430 = vset.pattern.permute.xlu0 %v452_v7 }
  0x89   : > { %v300_v12 = vpop.permute.xlu0 %299 }
  0xd0   : > { %v271_v9 = vpop.f32.mrf.mxu0 }
  0xd1   : > { %v272_v10 = vadd.f32 %v401_v8, %v271_v9 }
  0xd2   : > { %v414_v11 = vpop.f32.mrf.mxu0 }
  0xd3   : > { %434 = vtanh.f32 %v272_v10  ;;  %v276_v16 = vsel %vm275_vm2, %v272_v10, -inf }
  0xd4   : > { %v277_v17 = vrot.slane %v276_v16, 4 }
  0xd6   : > { %v278_v18 = vmax.f32 %v276_v16, %v277_v17 }
  0xd8   : > { %v279_v19 = vrot.slane %v278_v18, 2 }
  0xda   : > { %v280_v20 = vmax.f32 %v278_v18, %v279_v19 }
  0xdc   : > { %v281_v21 = vrot.slane %v280_v20, 1 }
  0xde   : > { %v282_v22 = vmax.f32 %v280_v20, %v281_v21 }
  0xe0   : > { %v435_v13 = vpop.eup %434  ;;  %v283_v23 = vsub.f32 %v272_v10, %v282_v22 }
  0xe1   : > { %v302_v14 = vmul.f32 %v435_v13, %v300_v12 }
  0xe2   : > { %v284_v24 = vmul.f32 1.442695, %v283_v23 }
  0xe3   : > { %318 = vperm.xlu1 %431, %v302_v14   ;;  %305 = vperm.xlu0 %430, %v302_v14  }
  0xe4   : > { %436 = vpow2.f32 %v284_v24 }
  0xe7   : > { %432 = vset.pattern.permute.xlu1 %v453_v15  ;;  %433 = vset.pattern.permute.xlu0 %v453_v15 }
  0xe8   : > { %331 = vperm.xlu1 %432, %v302_v14  }
  0xf1   : > { %v437_v25 = vpop.eup %436 }
  0xf2   : > { %v286_v26 = vsel %vm275_vm2, %v437_v25, 0.0 }
  0xf3   : > { %v287_v27 = vrot.slane %v286_v26, 4 }
  0xf5   : > { %v288_v28 = vadd.f32 %v287_v27, %v286_v26 }
  0xf7   : > { %v289_v29 = vrot.slane %v288_v28, 2 }
  0xf9   : > { %v290_v30 = vadd.f32 %v289_v29, %v288_v28 }
  0xfb   : > { %v291_v31 = vrot.slane %v290_v30, 1 }
  0xfd   : > { %v292_v32 = vadd.f32 %v291_v31, %v290_v30 }
  0xff   : > { %438 = vrcp.f32 %v292_v32 }
 0x10c   : > { %v439_v33 = vpop.eup %438 }
 0x10d   : > { %v294_v34 = vmul.f32 %v439_v33, %v437_v25 }
 0x15e   : > { %v319_v35 = vpop.permute.xlu1 %318  ;;  %v306_v36 = vpop.permute.xlu0 %305 }
 0x15f   : > { %v321_v37 = vmul.f32 %v319_v35, %v294_v34  ;;  %v308_v38 = vmul.f32 %v306_v36, %v294_v34 }
 0x161   : > { %v323_v39 = vsel %vm322_vm3, %v321_v37, 0.0  ;;  %v310_v40 = vsel %vm309_vm4, %v308_v38, 0.0 }
 0x162   : > { %v324_v41 = vrot.slane %v323_v39, 4  ;;  %v311_v42 = vrot.slane %v310_v40, 4 }
 0x163   : > { %v332_v43 = vpop.permute.xlu1 %331 }
 0x164   : > { %v325_v44 = vadd.f32 %v324_v41, %v323_v39  ;;  %v312_v45 = vadd.f32 %v311_v42, %v310_v40  ;;  %v334_v46 = vmul.f32 %v332_v43, %v294_v34 }
 0x166   : > { %v326_v47 = vrot.slane %v325_v44, 2  ;;  %v313_v48 = vrot.slane %v312_v45, 2  ;;  %v336_v49 = vsel %vm335_vm5, %v334_v46, 0.0 }
 0x167   : > { %v337_v50 = vrot.slane %v336_v49, 4 }
 0x168   : > { %v327_v51 = vadd.f32 %v326_v47, %v325_v44  ;;  %v314_v52 = vadd.f32 %v313_v48, %v312_v45 }
 0x169   : > { %v338_v53 = vadd.f32 %v337_v50, %v336_v49 }
 0x16a   : > { %v328_v54 = vrot.slane %v327_v51, 1  ;;  %v315_v55 = vrot.slane %v314_v52, 1 }
 0x16b   : > { %v339_v56 = vrot.slane %v338_v53, 2 }
 0x16c   : > { %v329_v58 = vadd.f32 %v328_v54, %v327_v51  ;;  %v316_v59 = vadd.f32 %v315_v55, %v314_v52 }
 0x16d   : > { %v340_v57 = vadd.f32 %v339_v56, %v338_v53 }
 0x16e   : > { %v343_v62 = vsel %vm201_vm1, %v316_v59, %v329_v58 }
 0x16f   : > { %v341_v60 = vrot.slane %v340_v57, 1 }
 0x171   : > { %v342_v61 = vadd.f32 %v341_v60, %v340_v57 }
 0x173   : > { %v345_v63 = vsel %vm344_vm6, %v343_v62, %v342_v61 }
 0x174   : > { %347 = vst.msk [vmem:[%s190_s5] sm:$0x1] %vm346_vm7, %v345_v63 }
 0x175 PF: > { %s14_s15 = sadd.s32 1, %s446_s15  }
 0x176   : > { %p11_p4 = scmp.ge.s32.totalorder %s14_s15, 4  }
 0x178   :  { %13 = sbr.rel (!%p11_p4) target bundleno = 1 (0x1), region = 66 }

// kernel: graphcare_forward.11
= control target key start
LH: loop header
LB: loop body
LE: loop exit
PB: predicated region body
PF: predicated region fallthrough
CT: control target
= control target key end

     0   :  { %v378_v0 = vmov 0   ;;  %vm34_vm0 = vcmask 261120   ;;  %v379_v8 = vmov 0.0   ;;  %vm380_vm1 = vmmov 0   ;;  %s515_s3 = inlined_call_operand.vmem [shape: s32[24,1], index: 3, kind: input, shape index: {}]   ;;  %s516_s1 = inlined_call_operand.vmem [shape: f32[16,1], index: 1, kind: input, shape index: {}]   ;;  %s517_s0 = inlined_call_operand.vmem [shape: f32[16,32], index: 0, kind: input, shape index: {}, may-alias: {0,7}]   ;;  %s518_s7 = inlined_call_operand.vmem [shape: f32[16,32], index: 7, kind: output, shape index: {}, may-alias: {0,7}]   ;;  %s519_s6 = inlined_call_operand.<no memory space> [shape: f32[1,1], index: 6, kind: input, shape index: {}]   ;;  %s520_s2 = inlined_call_operand.vmem [shape: f32[24,32], index: 2, kind: input, shape index: {}]   ;;  %s521_s5 = inlined_call_operand.vmem [shape: f32[1,32], index: 5, kind: input, shape index: {}]   ;;  %s522_s4 = inlined_call_operand.vmem [shape: s32[1,1,24], index: 4, kind: input, shape index: {}]  }
   0x1   :  { %377 = vset.pattern.permute.xlu1 %v378_v0  ;;  %376 = vset.pattern.permute.xlu0 %v378_v0  ;;  %v86_v1 = vld [vmem:[%s515_s3] sm:$0xff]  ;;  %v38_v2 = vld [vmem:[%s516_s1 + $0x8] sm:$0xff]  ;;  %v88_v7 = vld [vmem:[%s515_s3 + $0x10] sm:$0xff]  ;;  %v12_v9 = vstv %s519_s6  ;;  %v89_v23 = vlaneseq  ;;  %vm129_vm3 = vcmask 130048   ;;  %vm238_vm8 = vcmask 195584  }
   0x2   :  { %92 = vperm.xlu1 %377, %v86_v1   ;;  %46 = vperm.xlu0 %376, %v38_v2   ;;  %v87_v3 = vld [vmem:[%s515_s3 + $0x8] sm:$0xff]  ;;  %v37_v4 = vld [vmem:[%s516_s1] sm:$0xff]  ;;  %13 = vst [vmem:[#allocation3] sm:$0x1] %v12_v9  ;;  %v467_v12 = vld [vmem:[%s520_s2 + $0x10] sm:$0xff] }
   0x3   :  { %v33_v5 = vld [vmem:[%s517_s0 + $0x8] sm:$0xff]  ;;  %v32_v6 = vld [vmem:[%s517_s0] sm:$0xff]  ;;  %351 = vmatprep.subr.mxu0 %v379_v8  ;;  %355 = vmatprep.mubr.msk.f32.mxu0 %vm380_vm1, %v379_v8  ;;  %v90_v26 = vand.u32 127, %v89_v23  ;;  %v224_v41 = vshrl.u32 %v89_v23, 7 }
   0x4   :  { %36 = vst.msk [vmem:[%s518_s7 + $0x8] sm:$0xff] %vm34_vm0, %v33_v5  ;;  %35 = vst.msk [vmem:[%s518_s7] sm:$0xff] %vm34_vm0, %v32_v6  ;;  %v459_v10 = vld [vmem:[%s520_s2 + $0x8] sm:$0xff]  ;;  %v328_v11 = vld [vmem:[%s521_s5] ss:$0 sm:$0xff] }
   0x5   :  { %v64_v13 = vmul.f32 %v328_v11, %v459_v10  ;;  %v65_v14 = vmul.f32 %v328_v11, %v467_v12  ;;  %v474_v15 = vld [vmem:[%s520_s2] sm:$0xff]  ;;  %v225_v43 = vadd.s32 8, %v224_v41 }
   0x6   :  { %95 = vperm.xlu1 %377, %v87_v3   ;;  %41 = vperm.xlu0 %376, %v37_v4   ;;  %v63_v17 = vmul.f32 %v328_v11, %v474_v15  ;;  %v336_v42 = vld [vmem:[%s522_s4] ss:$0 sm:$0xff] }
   0x7   :  { %v70_v16 = vsel %vm34_vm0, %v64_v13, 0.0  ;;  %v73_v18 = vsel %vm34_vm0, %v65_v14, 0.0  ;;  %vm230_vm6 = vcmp.eq.s32.totalorder %v224_v41, %v336_v42  ;;  %vm231_vm7 = vcmp.eq.s32.totalorder %v225_v43, %v336_v42 }
   0x8   :  { %v67_v19 = vsel %vm34_vm0, %v63_v17, 0.0  ;;  %v337_v44 = vsel %vm230_vm6, 1.0, %v379_v8  ;;  %v338_v63 = vsel %vm231_vm7, 1.0, %v379_v8 }
   0x9   :  { %v329_v34 = vld [vmem:[#allocation3] ss:$0 sm:$0xff]  ;;  %370 = vmatprep.mubr.msk.f32.mxu1 %vm238_vm8, %v337_v44 }
   0xa   :  { %98 = vperm.xlu0 %376, %v88_v7  }
   0xb   :  { %v237_v0 = vld [vmem:[%s518_s7 + $0x8] sm:$0xff]  ;;  %v236_v2 = vld [vmem:[%s518_s7] sm:$0xff] }
  0x29   :  { %71 = vadd.xlane.f32.xlu0 %v70_v16 }
  0x2a   :  { %74 = vadd.xlane.f32.xlu1 %v73_v18 }
  0x2d   :  { %68 = vadd.xlane.f32.xlu0 %v67_v19 }
  0x7d   :  { %v47_v20 = vpop.permute.xlu0 %46  ;;  %v93_v25 = vpop.permute.xlu1 %92 }
  0x7e   :  { %v50_v21 = vmul.f32 %v47_v20, %v33_v5  ;;  %vm100_vm2 = vcmp.eq.s32.totalorder %v90_v26, %v93_v25 }
  0x7f   :  { %v330_v28 = vsel %vm100_vm2, 1.0, %v379_v8 }
  0x80   :  { %52 = vst.msk [vmem:[#allocation2 + $0x8] sm:$0xff] %vm34_vm0, %v50_v21 }
  0x81   :  { %v42_v22 = vpop.permute.xlu0 %41  ;;  %v96_v29 = vpop.permute.xlu1 %95 }
  0x82   :  { %v49_v24 = vmul.f32 %v42_v22, %v32_v6  ;;  %vm101_vm4 = vcmp.eq.s32.totalorder %v90_v26, %v96_v29 }
  0x83   :  { %v331_v32 = vsel %vm101_vm4, 1.0, %v379_v8 }
  0x84   :  { %51 = vst.msk [vmem:[#allocation2] sm:$0xff] %vm34_vm0, %v49_v24 }
  0x85   :  { %v99_v31 = vpop.permute.xlu0 %98 }
  0x86   :  { %vm102_vm5 = vcmp.eq.s32.totalorder %v90_v26, %v99_v31 }
  0x87   :  { %v110_v27 = vld [vmem:[#allocation2 + $0x8] sm:$0xff]  ;;  %v332_v33 = vsel %vm102_vm5, 1.0, %v379_v8 }
  0x88   :  { %352 = vmatpush3.msra.mxu0 %v110_v27 }
  0x89   :  { %353 = vmatprep.subr.mxu0 %v379_v8 }
  0x8b   :  { %v109_v30 = vld [vmem:[#allocation2] sm:$0xff] }
  0x8c   :  { %354 = vmatpush3.msra.mxu0 %v109_v30 }
  0x8d   :  { %356 = vmatmul.mubr.msk.f32.vlgmr.msra.gmra.mxu0 %vm129_vm3, %v330_v28 }
  0x8e   :  { %358 = vmatprep.mubr.msk.f32.mxu0 %vm380_vm1, %v379_v8 }
  0x91   :  { %359 = vmatmul.mubr.msk.f32.gmra.mxu0 %vm129_vm3, %v331_v32 }
  0x92   :  { %361 = vmatprep.mubr.msk.f32.mxu0 %vm380_vm1, %v379_v8 }
  0x95   :  { %362 = vmatmul.mubr.msk.f32.gmra.mxu0 %vm129_vm3, %v332_v33 }
  0xb2   :  { %v72_v35 = vpop.xlane.xlu0 %71 }
  0xb3   :  { %v84_v36 = vadd.f32 %v329_v34, %v72_v35  ;;  %v75_v37 = vpop.xlane.xlu1 %74 }
  0xb4   :  { %v85_v38 = vadd.f32 %v329_v34, %v75_v37 }
  0xb5   :  { %118 = vperm.xlu0 %376, %v84_v36  }
  0xb6   :  { %123 = vperm.xlu1 %377, %v85_v38   ;;  %v69_v39 = vpop.xlane.xlu0 %68 }
  0xb7   :  { %v83_v40 = vadd.f32 %v329_v34, %v69_v39 }
  0xba   :  { %113 = vperm.xlu1 %377, %v83_v40  }
 0x130   :  { %v119_v48 = vpop.permute.xlu0 %118 }
 0x131   :  { %v124_v45 = vpop.permute.xlu1 %123  ;;  %v127_v52 = vmul.f32 %v119_v48, %v459_v10 }
 0x132   :  { %v128_v53 = vmul.f32 %v124_v45, %v467_v12 }
 0x135   :  { %v114_v50 = vpop.permute.xlu1 %113 }
 0x136   :  { %v126_v55 = vmul.f32 %v114_v50, %v474_v15 }
 0x14d   :  { %v205_v46 = vpop.f32.mrf.mxu0 }
 0x14e   :  { %v206_v59 = vadd.f32 %v205_v46, %v126_v55 }
 0x14f   :  { %v357_v47 = vpop.f32.mrf.mxu0 }
 0x150   :  { %v219_v62 = vmax.f32 %v206_v59, 0.0 }
 0x151   :  { %v210_v49 = vpop.f32.mrf.mxu0 }
 0x152   :  { %v211_v56 = vadd.f32 %v210_v49, %v127_v52 }
 0x153   :  { %v360_v51 = vpop.f32.mrf.mxu0 }
 0x154   :  { %v220_v61 = vmax.f32 %v211_v56, 0.0 }
 0x155   :  { %v215_v54 = vpop.f32.mrf.mxu0 }
 0x156   :  { %v216_v57 = vadd.f32 %v215_v54, %v128_v53 }
 0x157   :  { %v363_v58 = vpop.f32.mrf.mxu0 }
 0x158   :  { %v221_v60 = vmax.f32 %v216_v57, 0.0 }
 0x15a   :  { %364 = vmatprep.subr.mxu1 %v221_v60 }
 0x15b   :  { %365 = vmatpush3.msra.mxu1 %v221_v60 }
 0x15c   :  { %366 = vmatprep.subr.mxu1 %v220_v61 }
 0x15d   :  { %367 = vmatpush3.msra.mxu1 %v220_v61 }
 0x15e   :  { %368 = vmatprep.subr.mxu1 %v219_v62 }
 0x15f   :  { %369 = vmatpush3.msra.mxu1 %v219_v62 }
 0x160   :  { %371 = vmatmul.mubr.msk.f32.vlgmr.msra.gmra.mxu1 %vm238_vm8, %v338_v63 }
 0x220   :  { %v372_v1 = vpop.f32.mrf.mxu1 }
 0x221   :  { %v321_v3 = vadd.f32 %v372_v1, %v237_v0 }
 0x222   :  { %v311_v4 = vpop.f32.mrf.mxu1 }
 0x223   :  { %323 = vst.msk [vmem:[%s518_s7 + $0x8] sm:$0xff] %vm34_vm0, %v321_v3  ;;  %v320_v5 = vadd.f32 %v311_v4, %v236_v2 }
 0x225   :  { %322 = vst.msk [vmem:[%s518_s7] sm:$0xff] %vm34_vm0, %v320_v5 }

// kernel: graphcare_forward.17
= control target key start
LH: loop header
LB: loop body
LE: loop exit
PB: predicated region body
PF: predicated region fallthrough
CT: control target
= control target key end

     0   :  { %vm123_vm0 = vcmask 123904   ;;  %v599_v3 = vmov 0.0   ;;  %s749_s0 = inlined_call_operand.vmem [shape: f32[12,32], index: 0, kind: input, shape index: {}]   ;;  %s750_s1 = inlined_call_operand.vmem [shape: f32[2,12], index: 1, kind: input, shape index: {}]   ;;  %s751_s2 = inlined_call_operand.vmem [shape: f32[2,16], index: 2, kind: input, shape index: {}]   ;;  %s752_s3 = inlined_call_operand.vmem [shape: f32[16,32], index: 3, kind: input, shape index: {}]   ;;  %s753_s4 = inlined_call_operand.vmem [shape: f32[32,32], index: 4, kind: input, shape index: {}]   ;;  %s754_s5 = inlined_call_operand.vmem [shape: f32[1,32], index: 5, kind: input, shape index: {}]   ;;  %s755_s6 = inlined_call_operand.vmem [shape: f32[32,5], index: 6, kind: input, shape index: {}]   ;;  %s756_s7 = inlined_call_operand.vmem [shape: f32[32,5], index: 7, kind: input, shape index: {}]   ;;  %s757_s8 = inlined_call_operand.vmem [shape: f32[1,5], index: 8, kind: input, shape index: {}]   ;;  %s758_s9 = inlined_call_operand.hbm [shape: f32[2,5], index: 9, kind: output, shape index: {}]  }
   0x1   :  { %v41_v0 = vld [vmem:[%s751_s2] sm:$0x3]  ;;  %v44_v1 = vld [vmem:[%s752_s3 + $0x8] sm:$0xff]  ;;  %521 = vmatprep.subr.mxu1 %v599_v3  ;;  %535 = vmatprep.subr.mxu0 %v599_v3 }
   0x2   :  { %v124_v2 = vsel %vm123_vm0, %v41_v0, 0.0  ;;  %v43_v4 = vld [vmem:[%s752_s3] sm:$0xff] }
   0x3   :  { %14 = vsyncpa [#allocation5], 0  ;;  %125 = vadd.xlane.f32.xlu0 %v124_v2  ;;  %522 = vmatpush3.msra.mxu1 %v44_v1  ;;  %vm45_vm1 = vcmask 130048   ;;  %vm600_vm2 = vmmov 0   ;;  %vm39_vm3 = vcmask 1024   ;;  %v601_v5 = vmov 0  }
   0x4   :  { %523 = vmatprep.subr.mxu1 %v599_v3  ;;  %525 = vmatprep.mubr.msk.f32.mxu1 %vm600_vm2, %v599_v3  ;;  %40 = vst.msk [vmem:[#allocation3] sm:$0x3] %vm39_vm3, %v599_v3  ;;  %vm37_vm4 = vcmask 254976   ;;  %v232_v9 = vld [vmem:[%s753_s4 + $0x18] sm:$0xff]  ;;  %v139_v10 = vld [vmem:[%s749_s0 + $0x8] sm:$0xf] }
   0x5   :  { %524 = vmatpush3.msra.mxu1 %v43_v4  ;;  %543 = vmatprep.mubr.msk.f32.mxu0 %vm600_vm2, %v599_v3  ;;  %38 = vst.msk [vmem:[#allocation2] sm:$0x3] %vm37_vm4, %v599_v3  ;;  %vm144_vm5 = vcmask 1043456   ;;  %v231_v11 = vld [vmem:[%s753_s4 + $0x10] sm:$0xff]  ;;  %v138_v12 = vld [vmem:[%s749_s0] sm:$0xff]  ;;  %v230_v13 = vld [vmem:[%s753_s4 + $0x8] sm:$0xff] }
   0x6   :  { %526 = vmatmul.mubr.msk.f32.vlgmr.msra.gmra.mxu1 %vm45_vm1, %v41_v0  ;;  %528 = vmatprep.subr.mxu1 %v599_v3  ;;  %v133_v14 = vld [vmem:[%s750_s1] sm:$0x3]  ;;  %vm140_vm6 = vcmask 97280   ;;  %vm134_vm7 = vcmask 91136   ;;  %v321_v18 = vld [vmem:[%s756_s7 + $0x18] sm:$0xff]  ;;  %v320_v23 = vld [vmem:[%s756_s7 + $0x10] sm:$0xff] }
   0x7   :  { %532 = vmatprep.mubr.msk.f32.mxu1 %vm600_vm2, %v599_v3  ;;  %572 = vset.pattern.permute.xlu0 %v601_v5  ;;  %v229_v16 = vld [vmem:[%s753_s4] sm:$0xff]  ;;  %v135_v17 = vsel %vm134_vm7, %v133_v14, 0.0  ;;  %vm240_vm8 = vcmask 261120   ;;  %v317_v28 = vld [vmem:[%s755_s6 + $0x18] sm:$0xff]  ;;  %v316_v29 = vld [vmem:[%s755_s6 + $0x10] sm:$0xff]  ;;  %s602_s20 = smov [#allocation4]  }
   0x8   :  { %536 = vmatpush3.msra.mxu0 %v232_v9  ;;  %529 = vmatpush3.msk.msra.mxu1 %vm144_vm5, %v139_v10  ;;  %v315_v30 = vld [vmem:[%s755_s6 + $0x8] sm:$0xff]  ;;  %v314_v37 = vld [vmem:[%s755_s6] sm:$0xff]  ;;  %s484_s21 = sshll.u32 %s602_s20, 4  ;;  %vm476_vm9 = vcmask 33792   ;;  %s485_s21 = int_to_ptr.vmem [resolvable:$true] %s484_s21 }
   0x9   :  { %537 = vmatprep.subr.mxu0 %v599_v3  ;;  %530 = vmatprep.subr.mxu1 %v599_v3  ;;  %v319_v36 = vld [vmem:[%s756_s7 + $0x8] sm:$0xff]  ;;  %v318_v38 = vld [vmem:[%s756_s7] sm:$0xff]  ;;  %p582_p1 = scmp.lt.s32.totalorder %s485_s21, %s485_s21 }
   0xa   :  { %538 = vmatpush3.msra.mxu0 %v231_v11  ;;  %531 = vmatpush3.msra.mxu1 %v138_v12  ;;  %v495_v39 = vld [vmem:[%s754_s5] ss:$0 sm:$0xff]  ;;  %s577_s5 = scalar_lea.vmem %s485_s21, 32 }
   0xb   :  { %v122_v6 = vld [vmem:[#allocation3] sm:$0x3]  ;;  %539 = vmatprep.subr.mxu0 %v599_v3  ;;  %533 = vmatmul.mubr.msk.f32.vlgmr.msra.gmra.mxu1 %vm140_vm6, %v133_v14  ;;  %v499_v46 = vld [vmem:[%s757_s8] ss:$0 sm:$0xff]  ;;  %p578_p0 = scmp.ne.s32.totalorder %s485_s21, %s577_s5  ;;  %p583_p2 = scmp.lt.s32.totalorder %s577_s5, %s577_s5 }
   0xc   :  { %540 = vmatpush3.msra.mxu0 %v230_v13  ;;  %546 = vmatprep.subr.mxu1 %v599_v3  ;;  %v42_v19 = vld [vmem:[#allocation2] sm:$0x3] }
   0xd   :  { %541 = vmatprep.subr.mxu0 %v599_v3  ;;  %554 = vmatprep.mubr.msk.f32.mxu1 %vm600_vm2, %v599_v3  ;;  %p584_p3 = por %p583_p2, %p582_p1 }
   0xe   :  { %542 = vmatpush3.msra.mxu0 %v229_v16  ;;  %136 = vadd.xlane.f32.xlu1 %v135_v17 }
   0xf   :  { %557 = vmatprep.subr.mxu0 %v599_v3  ;;  %547 = vmatpush3.msra.mxu1 %v321_v18  ;;  %p585_p4 = pnand %p584_p3, %p578_p0 }
  0x10   :  { %548 = vmatprep.subr.mxu1 %v599_v3 }
  0x11   :  { %549 = vmatpush3.msra.mxu1 %v320_v23 }
  0x12   :  { %550 = vmatprep.subr.mxu1 %v599_v3 }
  0x13   :  { %551 = vmatpush3.msra.mxu1 %v319_v36 }
  0x14   :  { %552 = vmatprep.subr.mxu1 %v599_v3 }
  0x15   :  { %553 = vmatpush3.msra.mxu1 %v318_v38 }
  0x8c   :  { %v126_v7 = vpop.xlane.xlu0 %125 }
  0x8d   :  { %v127_v8 = vadd.f32 %v126_v7, %v122_v6 }
  0x8f   :  { %129 = vst.msk [vmem:[#allocation3] sm:$0x3] %vm39_vm3, %v127_v8 }
  0x96   :  { %v221_v15 = vld [vmem:[#allocation3] sm:$0x3] }
  0x97   :  { %224 = vperm.xlu0 %572, %v221_v15   ;;  %v137_v31 = vpop.xlane.xlu1 %136 }
  0xc6   :  { %v115_v20 = vpop.f32.mrf.mxu1 }
  0xc7   :  { %v119_v21 = vadd.f32 %v115_v20, %v42_v19 }
  0xc8   :  { %v527_v22 = vpop.f32.mrf.mxu1 }
  0xc9   :  { %121 = vst.msk [vmem:[#allocation2] sm:$0x3] %vm37_vm4, %v119_v21 }
  0xcb   :  { %v214_v32 = vpop.f32.mrf.mxu1 }
  0xcd   :  { %v534_v33 = vpop.f32.mrf.mxu1 }
  0xd0   :  { %v220_v25 = vld [vmem:[#allocation2] sm:$0x3] }
 0x112   :  { %v225_v24 = vpop.permute.xlu0 %224 }
 0x113   :  { %573 = vrcp.f32 %v225_v24 }
 0x114   :  { %575 = vrcp.f32 %v137_v31 }
 0x120   :  { %v574_v26 = vpop.eup %573 }
 0x121   :  { %v228_v27 = vmul.f32 %v574_v26, %v220_v25  ;;  %v576_v34 = vpop.eup %575 }
 0x122   :  { %v219_v35 = vmul.f32 %v576_v34, %v214_v32 }
 0x123   :  { %544 = vmatmul.mubr.msk.f32.vlgmr.msra.gmra.mxu0 %vm240_vm8, %v228_v27 }
 0x124   :  { %558 = vmatpush3.msra.mxu0 %v317_v28  ;;  %565 = vmatprep.mubr.msk.f32.mxu0 %vm600_vm2, %v599_v3 }
 0x125   :  { %559 = vmatprep.subr.mxu0 %v599_v3 }
 0x126   :  { %560 = vmatpush3.msra.mxu0 %v316_v29 }
 0x127   :  { %561 = vmatprep.subr.mxu0 %v599_v3 }
 0x128   :  { %562 = vmatpush3.msra.mxu0 %v315_v30 }
 0x129   :  { %563 = vmatprep.subr.mxu0 %v599_v3 }
 0x12a   :  { %564 = vmatpush3.msra.mxu0 %v314_v37 }
 0x12b   :  { %566 = vmatmul.mubr.msk.f32.vlgmr.msra.gmra.mxu0 %vm240_vm8, %v219_v35 }
 0x1e3   :  { %v310_v40 = vpop.f32.mrf.mxu0 }
 0x1e4   :  { %v311_v41 = vadd.f32 %v495_v39, %v310_v40 }
 0x1e5   :  { %v545_v42 = vpop.f32.mrf.mxu0 }
 0x1e6   :  { %555 = vmatmul.mubr.msk.f32.vlgmr.msra.gmra.mxu1 %vm240_vm8, %v311_v41 }
 0x1eb   :  { %v464_v43 = vpop.f32.mrf.mxu0 }
 0x1ed   :  { %v567_v44 = vpop.f32.mrf.mxu0 }
 0x2a6   :  { %v391_v45 = vpop.f32.mrf.mxu1 }
 0x2a7   :  { %v465_v47 = vadd.f32 %v464_v43, %v391_v45 }
 0x2a8   :  { %v556_v48 = vpop.f32.mrf.mxu1 }
 0x2a9   :  { %v475_v49 = vadd.f32 %v499_v46, %v465_v47 }
 0x2ab   :  { %477 = vst.msk [vmem:[#allocation4] sm:$0x3] %vm476_vm9, %v475_v49 }
 0x2ac   :  { %588 = shalt.err (!%p585_p4)
}
 0x2ad   :  { %487 = dma.vmem_to_hbm [thread:$0]  %s485_s21, 32, %s758_s9, [#allocation5]  }
 0x2ae   :  { %597 = dma.done.wait [#allocation5], 32  }
 0x2af   :  { %598 = vsyncadd [#allocation5], 4294967264 }
 0x2b0   :  { %491 = vsyncpa [#allocation5], 1 }

</bundles_post_ra>
